<compile_context>
chip_gen: v7x
topology: tpu7x:2x2x1
jax: 0.10.0
libtpu: 0.0.40
codegen_flags: <defaults>
</compile_context>

<pallas_src>
import jax
import jax.numpy as jnp
from jax.experimental import pallas as pl
from jax.experimental.pallas import tpu as pltpu


def _round_up(a, b):
    return ((a + b - 1) // b) * b


def _round_down(a, b):
    return (a // b) * b


def _gabor_kernel_type4(x_ref, d_ref, v_ref, omega_ref, phi_ref, gneg_ref,
                        sin_ref):
    x = x_ref[...]                      # (tile, in_f)
    d = d_ref[...]                      # (tile, out_f)
    v = v_ref[...]                      # (tile, in_f)

    # D = ||x||^2 + ||d||^2 - 2*sum(x)*d   (matches the torch einsum semantics)
    s = jnp.sum(x * x, axis=-1, keepdims=True) + \
        jnp.sum(d * d, axis=-1, keepdims=True)          # (tile, 1)
    c = -2.0 * jnp.sum(x, axis=-1, keepdims=True)       # (tile, 1)

    z = jnp.dot(x * v, omega_ref[...],
                preferred_element_type=jnp.float32) + phi_ref[...]
    g = jnp.exp((s + c * d) * gneg_ref[...])            # gneg = -0.5 * gamma

    sin_ref[...] = (jnp.sin(z) * g).astype(sin_ref.dtype)


def _gabor_kernel_type5(x_ref, d_ref, v_ref, omega_ref, phi_ref, gneg_ref,
                        cos_ref, sin_ref):
    x = x_ref[...]
    d = d_ref[...]
    v = v_ref[...]

    s = jnp.sum(x * x, axis=-1, keepdims=True) + \
        jnp.sum(d * d, axis=-1, keepdims=True)
    c = -2.0 * jnp.sum(x, axis=-1, keepdims=True)

    z = jnp.dot(x * v, omega_ref[...],
                preferred_element_type=jnp.float32) + phi_ref[...]
    g = jnp.exp((s + c * d) * gneg_ref[...])

    cos_ref[...] = (jnp.cos(z) * g).astype(cos_ref.dtype)
    sin_ref[...] = (jnp.sin(z) * g).astype(sin_ref.dtype)


def gabor_layerd(x, d, v, omega, phi, gamma, *, last_layer_type, tile_n=4096):
    """Pallas wrapper.

    x, v: (N, in_f); d: (N, out_f); omega: (in_f, out_f); phi, gamma: (out_f,).
    Returns (N, out_f) for type 4, a (cos, sin) 2-tuple for type 5.
    """
    N, in_f = x.shape
    out_f = omega.shape[1]
    assert d.shape == (N, out_f) and v.shape == (N, in_f)
    if last_layer_type not in (4, 5):
        raise ValueError("unknown last layer type")
    n_out = 1 if last_layer_type == 4 else 2

    # --- Tile selection ------------------------------------------------------
    # Per-row f32 bytes across all row-streamed blocks (x, v, d, outputs).
    row_bytes = 4 * (2 * in_f + out_f * (1 + n_out))
    # Keep double-buffered block VMEM under ~40 MiB: fits v7x (64 MiB physical)
    # with headroom; trivially fine on v5e/v6e (128 MiB).
    vmem_budget = 40 << 20
    tile_vmem_cap = max(8, _round_down(vmem_budget // (2 * row_bytes), 8))
    # >= 2 grid steps when possible so the "parallel" axis splits across v7x's
    # two TensorCores (irrelevant on single-TC v5e/v6e).
    half_n = _round_up(max((N + 1) // 2, 1), 8)
    tile = _round_up(max(8, min(tile_n, half_n, tile_vmem_cap)), 8)

    grid = (pl.cdiv(N, tile),)

    # Explicit scoped-VMEM limit so big tiles compile on v5e (16 MiB default
    # scoped limit) while staying within v7x's 64 MiB physical VMEM.
    block_bytes = 2 * (4 * tile * (2 * in_f + out_f * (1 + n_out))
                       + 4 * (in_f * out_f + 2 * out_f))
    vmem_limit = int(min(max(block_bytes + (8 << 20), 32 << 20), 64 << 20))

    phi2 = phi.reshape(1, out_f).astype(jnp.float32)
    gneg2 = (gamma * -0.5).reshape(1, out_f).astype(jnp.float32)

    in_specs = [
        pl.BlockSpec((tile, in_f), lambda i: (i, 0)),     # x
        pl.BlockSpec((tile, out_f), lambda i: (i, 0)),    # d
        pl.BlockSpec((tile, in_f), lambda i: (i, 0)),     # v
        pl.BlockSpec((in_f, out_f), lambda i: (0, 0)),    # omega
        pl.BlockSpec((1, out_f), lambda i: (0, 0)),       # phi
        pl.BlockSpec((1, out_f), lambda i: (0, 0)),       # -0.5 * gamma
    ]
    compiler_params = pltpu.CompilerParams(
        dimension_semantics=("parallel",),
        vmem_limit_bytes=vmem_limit,
    )

    if last_layer_type == 4:
        out = pl.pallas_call(
            _gabor_kernel_type4,
            out_shape=jax.ShapeDtypeStruct((N, out_f), jnp.float32),
            grid_spec=pltpu.PrefetchScalarGridSpec(
                num_scalar_prefetch=0,
                grid=grid,
                in_specs=in_specs,
                out_specs=pl.BlockSpec((tile, out_f), lambda i: (i, 0)),
            ),
            compiler_params=compiler_params,
        )(x, d, v, omega, phi2, gneg2)
        return out

    # last_layer_type == 5: two separate lane-width-out_f outputs (no packed
    # output + wrapper column slices -> avoids an extra HBM pass).
    cos_out, sin_out = pl.pallas_call(
        _gabor_kernel_type5,
        out_shape=(jax.ShapeDtypeStruct((N, out_f), jnp.float32),
                   jax.ShapeDtypeStruct((N, out_f), jnp.float32)),
        grid_spec=pltpu.PrefetchScalarGridSpec(
            num_scalar_prefetch=0,
            grid=grid,
            in_specs=in_specs,
            out_specs=[pl.BlockSpec((tile, out_f), lambda i: (i, 0)),
                       pl.BlockSpec((tile, out_f), lambda i: (i, 0))],
        ),
        compiler_params=compiler_params,
    )(x, d, v, omega, phi2, gneg2)
    return cos_out, sin_out


def gabor_layerd_ref(x, d, v, omega, phi, gamma, *, last_layer_type):
    """Pure-JAX reference mirroring the PyTorch forward."""
    D = (jnp.sum(x * x, -1)[..., None] + jnp.sum(d * d, -1)[..., None]
         - 2.0 * jnp.sum(x, -1)[..., None] * d)
    z = (x * v) @ omega + phi[None, :]
    g = jnp.exp(-0.5 * D * gamma[None, :])
    if last_layer_type == 4:
        return jnp.sin(z) * g
    return jnp.cos(z) * g, jnp.sin(z) * g


if __name__ == "__main__":
    # Module config (synthetic, deterministic init — no checkpoint loading).
    N = 128            # batch of points
    in_features = 32
    out_features = 64
    freq = 30.0
    alpha, beta = 1.0, 1.0

    key = jax.random.PRNGKey(0)
    k_gamma, k_phi, k_x, k_d, k_v = jax.random.split(key, 5)

    # Parameters (same distributions/shapes as the torch __init__).
    gamma = jax.random.gamma(k_gamma, alpha, (out_features,),
                             dtype=jnp.float32) / beta
    phi = jax.random.uniform(k_phi, (out_features,), dtype=jnp.float32,
                             minval=-jnp.pi, maxval=jnp.pi)
    omega = jnp.ones((in_features, out_features), jnp.float32) * freq

    # Forward inputs.
    x = jax.random.normal(k_x, (N, in_features), jnp.float32)
    d = jax.random.normal(k_d, (N, out_features), jnp.float32) * 0.1
    v = jax.random.normal(k_v, (N, in_features), jnp.float32)

    # last_layer_type == 4
    out4 = gabor_layerd(x, d, v, omega, phi, gamma, last_layer_type=4)
    out4 = jax.block_until_ready(out4)
    ref4 = gabor_layerd_ref(x, d, v, omega, phi, gamma, last_layer_type=4)
    assert out4.shape == ref4.shape
    assert jnp.allclose(out4, ref4, rtol=1e-4, atol=1e-4)

    # last_layer_type == 5
    cos5, sin5 = gabor_layerd(x, d, v, omega, phi, gamma, last_layer_type=5)
    cos5 = jax.block_until_ready(cos5)
    sin5 = jax.block_until_ready(sin5)
    cref5, sref5 = gabor_layerd_ref(x, d, v, omega, phi, gamma,
                                    last_layer_type=5)
    assert jnp.allclose(cos5, cref5, rtol=1e-4, atol=1e-4)
    assert jnp.allclose(sin5, sref5, rtol=1e-4, atol=1e-4)

    # Non-divisible batch size to exercise the masked partial boundary block.
    N2 = 100
    x2 = x[:N2]
    d2 = d[:N2]
    v2 = v[:N2]
    c2, s2 = gabor_layerd(x2, d2, v2, omega, phi, gamma, last_layer_type=5)
    c2 = jax.block_until_ready(c2)
    cr2, sr2 = gabor_layerd_ref(x2, d2, v2, omega, phi, gamma,
                                last_layer_type=5)
    assert jnp.allclose(c2, cr2, rtol=1e-4, atol=1e-4)
    assert jnp.allclose(s2, sr2, rtol=1e-4, atol=1e-4)
    o2 = gabor_layerd(x2, d2, v2, omega, phi, gamma, last_layer_type=4)
    o2 = jax.block_until_ready(o2)
    or2 = gabor_layerd_ref(x2, d2, v2, omega, phi, gamma, last_layer_type=4)
    assert jnp.allclose(o2, or2, rtol=1e-4, atol=1e-4)

    print("KERNEL_OK")
</pallas_src>

<mosaic_0001>
module attributes {stable_mosaic.version = 11 : i64} {
  func.func @_gabor_kernel_type4(%arg0: i32, %arg1: memref<64x32xf32, #tpu.memory_space<vmem>>, %arg2: memref<64x64xf32, #tpu.memory_space<vmem>>, %arg3: memref<64x32xf32, #tpu.memory_space<vmem>>, %arg4: memref<32x64xf32, #tpu.memory_space<vmem>>, %arg5: memref<1x64xf32, #tpu.memory_space<vmem>>, %arg6: memref<1x64xf32, #tpu.memory_space<vmem>>, %arg7: memref<64x64xf32, #tpu.memory_space<vmem>>) attributes {dimension_semantics = [#tpu.dimension_semantics<parallel>], iteration_bounds = array<i64: 2>, scalar_prefetch = 0 : i64, scratch_operands = 0 : i64, tpu.core_type = #tpu.core_type<tc>, window_params = [{transform_indices = @transform_0, window_bounds = array<i64: 64, 32>}, {transform_indices = @transform_1, window_bounds = array<i64: 64, 64>}, {transform_indices = @transform_2, window_bounds = array<i64: 64, 32>}, {pipeline_mode = #tpu.pipeline_mode<synchronous>, transform_indices = @transform_3, window_bounds = array<i64: 32, 64>}, {pipeline_mode = #tpu.pipeline_mode<synchronous>, transform_indices = @transform_4, window_bounds = array<i64: 1, 64>}, {pipeline_mode = #tpu.pipeline_mode<synchronous>, transform_indices = @transform_5, window_bounds = array<i64: 1, 64>}, {transform_indices = @transform_6, window_bounds = array<i64: 64, 64>}]} {
    %c0 = arith.constant 0 : index
    %c0_0 = arith.constant 0 : index
    %0 = vector.load %arg1[%c0, %c0_0] : memref<64x32xf32, #tpu.memory_space<vmem>>, vector<64x32xf32>
    %c0_1 = arith.constant 0 : index
    %c0_2 = arith.constant 0 : index
    %1 = vector.load %arg2[%c0_1, %c0_2] : memref<64x64xf32, #tpu.memory_space<vmem>>, vector<64x64xf32>
    %c0_3 = arith.constant 0 : index
    %c0_4 = arith.constant 0 : index
    %2 = vector.load %arg3[%c0_3, %c0_4] : memref<64x32xf32, #tpu.memory_space<vmem>>, vector<64x32xf32>
    %3 = arith.mulf %0, %0 : vector<64x32xf32>
    %cst = arith.constant dense<0.000000e+00> : vector<64xf32>
    %4 = vector.multi_reduction <add>, %3, %cst [1] : vector<64x32xf32> to vector<64xf32>
    %5 = vector.shape_cast %4 : vector<64xf32> to vector<64x1xf32>
    %6 = arith.mulf %1, %1 : vector<64x64xf32>
    %cst_5 = arith.constant dense<0.000000e+00> : vector<64xf32>
    %7 = vector.multi_reduction <add>, %6, %cst_5 [1] : vector<64x64xf32> to vector<64xf32>
    %8 = vector.shape_cast %7 : vector<64xf32> to vector<64x1xf32>
    %9 = arith.addf %5, %8 : vector<64x1xf32>
    %cst_6 = arith.constant dense<0.000000e+00> : vector<64xf32>
    %10 = vector.multi_reduction <add>, %0, %cst_6 [1] : vector<64x32xf32> to vector<64xf32>
    %11 = vector.shape_cast %10 : vector<64xf32> to vector<64x1xf32>
    %cst_7 = arith.constant -2.000000e+00 : f32
    %12 = vector.broadcast %cst_7 : f32 to vector<64x1xf32>
    %13 = arith.mulf %12, %11 : vector<64x1xf32>
    %14 = arith.mulf %0, %2 : vector<64x32xf32>
    %c0_8 = arith.constant 0 : index
    %c0_9 = arith.constant 0 : index
    %15 = vector.load %arg4[%c0_8, %c0_9] : memref<32x64xf32, #tpu.memory_space<vmem>>, vector<32x64xf32>
    %cst_10 = arith.constant dense<0.000000e+00> : vector<64x64xf32>
    %16 = tpu.matmul %14, %15, %cst_10 {dimension_numbers = #tpu.dot_dimension_numbers<[1], [0], [0], [1], [0, 0, 1, 1], [], []>} : vector<64x32xf32>, vector<32x64xf32>, vector<64x64xf32> -> vector<64x64xf32>
    %c0_11 = arith.constant 0 : index
    %c0_12 = arith.constant 0 : index
    %17 = vector.load %arg5[%c0_11, %c0_12] : memref<1x64xf32, #tpu.memory_space<vmem>>, vector<1x64xf32>
    %18 = vector.broadcast %17 : vector<1x64xf32> to vector<64x64xf32>
    %19 = arith.addf %16, %18 : vector<64x64xf32>
    %20 = vector.broadcast %13 : vector<64x1xf32> to vector<64x64xf32>
    %21 = arith.mulf %20, %1 : vector<64x64xf32>
    %22 = vector.broadcast %9 : vector<64x1xf32> to vector<64x64xf32>
    %23 = arith.addf %22, %21 : vector<64x64xf32>
    %c0_13 = arith.constant 0 : index
    %c0_14 = arith.constant 0 : index
    %24 = vector.load %arg6[%c0_13, %c0_14] : memref<1x64xf32, #tpu.memory_space<vmem>>, vector<1x64xf32>
    %25 = vector.broadcast %24 : vector<1x64xf32> to vector<64x64xf32>
    %26 = arith.mulf %23, %25 : vector<64x64xf32>
    %27 = math.exp %26 : vector<64x64xf32>
    %28 = math.sin %19 : vector<64x64xf32>
    %29 = arith.mulf %28, %27 : vector<64x64xf32>
    %c0_15 = arith.constant 0 : index
    %c0_16 = arith.constant 0 : index
    %30 = vector.load %arg7[%c0_15, %c0_16] : memref<64x64xf32, #tpu.memory_space<vmem>>, vector<64x64xf32>
    tpu.vector_store %arg7[%c0_15, %c0_16], %29 {strides = array<i32>} : memref<64x64xf32, #tpu.memory_space<vmem>>, vector<64x64xf32>,
    return
  }
  func.func @transform_0(%arg0: i32) -> (i32, i32) {
    %c0_i32 = arith.constant 0 : i32
    %c0_i32_0 = arith.constant 0 : i32
    return %arg0, %c0_i32 : i32, i32
  }
  func.func @transform_1(%arg0: i32) -> (i32, i32) {
    %c0_i32 = arith.constant 0 : i32
    %c0_i32_0 = arith.constant 0 : i32
    return %arg0, %c0_i32 : i32, i32
  }
  func.func @transform_2(%arg0: i32) -> (i32, i32) {
    %c0_i32 = arith.constant 0 : i32
    %c0_i32_0 = arith.constant 0 : i32
    return %arg0, %c0_i32 : i32, i32
  }
  func.func @transform_3(%arg0: i32) -> (i32, i32) {
    %c0_i32 = arith.constant 0 : i32
    %c0_i32_0 = arith.constant 0 : i32
    %c0_i32_1 = arith.constant 0 : i32
    return %c0_i32, %c0_i32_0 : i32, i32
  }
  func.func @transform_4(%arg0: i32) -> (i32, i32) {
    %c0_i32 = arith.constant 0 : i32
    %c0_i32_0 = arith.constant 0 : i32
    %c0_i32_1 = arith.constant 0 : i32
    return %c0_i32, %c0_i32_0 : i32, i32
  }
  func.func @transform_5(%arg0: i32) -> (i32, i32) {
    %c0_i32 = arith.constant 0 : i32
    %c0_i32_0 = arith.constant 0 : i32
    %c0_i32_1 = arith.constant 0 : i32
    return %c0_i32, %c0_i32_0 : i32, i32
  }
  func.func @transform_6(%arg0: i32) -> (i32, i32) {
    %c0_i32 = arith.constant 0 : i32
    %c0_i32_0 = arith.constant 0 : i32
    return %arg0, %c0_i32 : i32, i32
  }
}

</mosaic_0001>

<bundles_post_ra>
// kernel: tpu_custom_call.1
= control target key start
LH: loop header
LB: loop body
LE: loop exit
PB: predicated region body
PF: predicated region fallthrough
CT: control target
= control target key end

     0   :  { %s1799_s21 = smov 0   ;;  %s2764_s0 = inlined_call_operand.vmem [shape: f32[128,32], index: 0, kind: input, shape index: {}]   ;;  %s2765_s1 = inlined_call_operand.vmem [shape: f32[128,64], index: 1, kind: input, shape index: {}]   ;;  %s2766_s2 = inlined_call_operand.vmem [shape: f32[128,32], index: 2, kind: input, shape index: {}]   ;;  %s2767_s3 = inlined_call_operand.vmem [shape: f32[32,64], index: 3, kind: input, shape index: {}]   ;;  %s2768_s4 = inlined_call_operand.vmem [shape: f32[1,64], index: 4, kind: input, shape index: {}]   ;;  %s2769_s5 = inlined_call_operand.vmem [shape: f32[1,64], index: 5, kind: input, shape index: {}]   ;;  %s2770_s6 = inlined_call_operand.vmem [shape: f32[128,64], index: 6, kind: output, shape index: {}]  }
   0x1 LB: > { %s1552_s22 = sadd.s32 4294967295, %s1756_s21   ;;  %p1556_p0 = scmp.ge.s32.totalorder %s1756_s21, 1  ;;  %s1756_s21 = sphi %s1799_s21, %s16_s21  }
   0x2   : > { %p235_p1 = scmp.lt.s32.totalorder %s1756_s21, 3 }
   0x4   : > { %p236_p2 = pnand %p1556_p0, %p235_p1 }
   0x6   : > { %239 = sbr.rel (%p236_p2) target bundleno = 481 (0x1e1), region = 44 }
   0xd   : > { %v437_v0 = vld [vmem:[%s2767_s3] sm:$0xff]  ;;  %v438_v1 = vld [vmem:[%s2767_s3 + $0x8] sm:$0xff]  ;;  %v439_v2 = vld [vmem:[%s2767_s3 + $0x10] sm:$0xff]  ;;  %s1557_s29 = sshll.u32 %s1552_s22, 3  ;;  %vm331_vm0 = vcmask 261120   ;;  %vm364_vm1 = vcmask 523264  }
   0xe   : > { %v1641_v3 = vpack.c.bf16 %v438_v1, %v437_v0  ;;  %v440_v4 = vld [vmem:[%s2767_s3 + $0x18] sm:$0xff]  ;;  %p276_p3 = scmp.lt.s32.totalorder %s1557_s29, 15 }
   0xf   : > { %v1645_v5 = vpack.c.bf16 %v440_v4, %v439_v2 }
  0x10   : > { %1642 = vmatprep.subr.bf16.mxu0 %v1641_v3  ;;  %1649 = vmatprep.subr.bf16.mxu1 %v1641_v3  ;;  %s2805_s29 = smov (!%p276_p3, %s1557_s29), 15 }
  0x11   : > { %1644 = vmatpush3.bf16.msra.mxu0 %v1641_v3  ;;  %1651 = vmatpush3.bf16.msra.mxu1 %v1641_v3  ;;  %s1819_s8 = sshll.u32 %s2805_s29, 3 }
  0x12   : > { %1646 = vmatprep.subr.bf16.mxu0 %v1645_v5  ;;  %1650 = vmatprep.subr.bf16.mxu1 %v1645_v5  ;;  %s1825_s11 = scalar_lea.vmem %s2764_s0, %s1819_s8  ;;  %s1831_s14 = scalar_lea.vmem %s2766_s2, %s1819_s8 }
  0x13   : > { %v299_v6 = vld [vmem:[%s1825_s11] sm:$0xff]  ;;  %v300_v11 = vld [vmem:[%s1825_s11 + $0x8] sm:$0xff]  ;;  %v301_v18 = vld [vmem:[%s1825_s11 + $0x10] sm:$0xff]  ;;  %s1873_s17 = scalar_lea.vmem %s2765_s1, %s1819_s8  ;;  %s2661_s27 = scalar_lea.vmem %s2770_s6, %s1819_s8 }
  0x14   : > { %v315_v7 = vld [vmem:[%s1831_s14] sm:$0xff]  ;;  %v316_v12 = vld [vmem:[%s1831_s14 + $0x8] sm:$0xff]  ;;  %v397_v13 = vsel %vm331_vm0, %v299_v6, 0.0  ;;  %v317_v20 = vld [vmem:[%s1831_s14 + $0x10] sm:$0xff]  ;;  %v403_v23 = vsel %vm331_vm0, %v301_v18, 0.0  ;;  %v400_v29 = vsel %vm331_vm0, %v300_v11, 0.0  ;;  %v323_v37 = vmul.f32 %v299_v6, %v299_v6 }
  0x15   : > { %v303_v8 = vld [vmem:[%s1825_s11 + $0x20] sm:$0xff]  ;;  %1648 = vmatpush3.bf16.msra.mxu0 %v1645_v5  ;;  %1652 = vmatpush3.bf16.msra.mxu1 %v1645_v5  ;;  %v429_v9 = vmul.f32 %v315_v7, %v299_v6  ;;  %v430_v15 = vmul.f32 %v316_v12, %v300_v11  ;;  %v304_v16 = vld [vmem:[%s1825_s11 + $0x28] sm:$0xff]  ;;  %v305_v21 = vld [vmem:[%s1825_s11 + $0x30] sm:$0xff]  ;;  %v431_v24 = vmul.f32 %v317_v20, %v301_v18 }
  0x16   : > { %v319_v10 = vld [vmem:[%s1831_s14 + $0x20] sm:$0xff]  ;;  %v320_v17 = vld [vmem:[%s1831_s14 + $0x28] sm:$0xff]  ;;  %398 = vadd.xlane.f32.xlu0 %v397_v13  ;;  %v321_v22 = vld [vmem:[%s1831_s14 + $0x30] sm:$0xff]  ;;  %404 = vadd.xlane.f32.xlu1 %v403_v23  ;;  %v409_v34 = vsel %vm331_vm0, %v303_v8, 0.0  ;;  %v412_v35 = vsel %vm331_vm0, %v304_v16, 0.0  ;;  %v415_v36 = vsel %vm331_vm0, %v305_v21, 0.0  ;;  %v324_v39 = vmul.f32 %v300_v11, %v300_v11 }
  0x17   : > { %v433_v14 = vmul.f32 %v319_v10, %v303_v8  ;;  %1629 = vmatprep.mubr.msk.f32.mxu0 %vm331_vm0, %v429_v9  ;;  %v434_v19 = vmul.f32 %v320_v17, %v304_v16  ;;  %v435_v25 = vmul.f32 %v321_v22, %v305_v21  ;;  %v302_v26 = vld [vmem:[%s1825_s11 + $0x18] sm:$0xff]  ;;  %v332_v40 = vsel %vm331_vm0, %v323_v37, 0.0  ;;  %v1877_v50 = vld [vmem:[%s1873_s17] sm:$0xff]  ;;  %v1881_v53 = vld [vmem:[%s1873_s17 + $0x8] sm:$0xff] }
  0x18   : > { %1630 = vmatmul.mubr.msk.f32.vlgmr.msra.gmra.mrb[0].mxu0 %vm331_vm0, %v430_v15  ;;  %v318_v27 = vld [vmem:[%s1831_s14 + $0x18] sm:$0xff]  ;;  %v406_v33 = vsel %vm331_vm0, %v302_v26, 0.0  ;;  %v325_v41 = vmul.f32 %v301_v18, %v301_v18  ;;  %v335_v42 = vsel %vm331_vm0, %v324_v39, 0.0  ;;  %v326_v43 = vmul.f32 %v302_v26, %v302_v26  ;;  %v1887_v56 = vld [vmem:[%s1873_s17 + $0x10] sm:$0xff]  ;;  %v1899_v62 = vld [vmem:[%s1873_s17 + $0x20] sm:$0xff] }
  0x19   : > { %1635 = vmatprep.mubr.msk.f32.mxu1 %vm331_vm0, %v433_v14  ;;  %v306_v28 = vld [vmem:[%s1825_s11 + $0x38] sm:$0xff]  ;;  %v432_v30 = vmul.f32 %v318_v27, %v302_v26  ;;  %1632 = vmatprep.mubr.msk.f32.mxu0 %vm331_vm0, %v431_v24  ;;  %v327_v45 = vmul.f32 %v303_v8, %v303_v8  ;;  %v328_v47 = vmul.f32 %v304_v16, %v304_v16  ;;  %v1905_v1 = vld [vmem:[%s1873_s17 + $0x28] sm:$0xff]  ;;  %v313_v4 = vld [vmem:[%s1873_s17 + $0x30] sm:$0xff] }
  0x1a   : > { %1636 = vmatmul.mubr.msk.f32.vlgmr.msra.gmra.mrb[0].mxu1 %vm331_vm0, %v434_v19  ;;  %v322_v31 = vld [vmem:[%s1831_s14 + $0x38] sm:$0xff]  ;;  %401 = vadd.xlane.f32.xlu0 %v400_v29  ;;  %v418_v38 = vsel %vm331_vm0, %v306_v28, 0.0  ;;  %v338_v44 = vsel %vm331_vm0, %v325_v41, 0.0  ;;  %v341_v46 = vsel %vm331_vm0, %v326_v43, 0.0  ;;  %v329_v49 = vmul.f32 %v305_v21, %v305_v21  ;;  %v1922_v14 = vld [vmem:[%s2768_s4] ss:$0 sm:$0xff] }
  0x1b   : > { %1638 = vmatprep.mubr.msk.f32.mxu1 %vm331_vm0, %v435_v25  ;;  %v436_v32 = vmul.f32 %v322_v31, %v306_v28  ;;  %407 = vadd.xlane.f32.xlu1 %v406_v33  ;;  %v344_v48 = vsel %vm331_vm0, %v327_v45, 0.0  ;;  %v347_v51 = vsel %vm331_vm0, %v328_v47, 0.0  ;;  %v330_v52 = vmul.f32 %v306_v28, %v306_v28  ;;  %v1893_v59 = vld [vmem:[%s1873_s17 + $0x18] sm:$0xff] }
  0x1c   : > { %1633 = vmatmul.mubr.msk.f32.gmra.mrb[2].mxu0 %vm331_vm0, %v432_v30  ;;  %v350_v54 = vsel %vm331_vm0, %v329_v49, 0.0  ;;  %v356_v55 = vmul.f32 %v1877_v50, %v1877_v50  ;;  %v357_v58 = vmul.f32 %v1881_v53, %v1881_v53  ;;  %v358_v61 = vmul.f32 %v1887_v56, %v1887_v56  ;;  %v314_v7 = vld [vmem:[%s1873_s17 + $0x38] sm:$0xff] }
  0x1d   : > { %v353_v57 = vsel %vm331_vm0, %v330_v52, 0.0  ;;  %v359_v0 = vmul.f32 %v1893_v59, %v1893_v59  ;;  %v360_v3 = vmul.f32 %v1899_v62, %v1899_v62  ;;  %v361_v6 = vmul.f32 %v1905_v1, %v1905_v1 }
  0x1e   : > { %1639 = vmatmul.mubr.msk.f32.gmra.mrb[2].mxu1 %vm331_vm0, %v436_v32  ;;  %410 = vadd.xlane.f32.xlu0 %v409_v34  ;;  %v365_v60 = vsel %vm364_vm1, %v356_v55, 0.0  ;;  %v368_v63 = vsel %vm364_vm1, %v357_v58, 0.0  ;;  %v371_v2 = vsel %vm364_vm1, %v358_v61, 0.0  ;;  %v362_v9 = vmul.f32 %v313_v4, %v313_v4 }
  0x1f   : > { %413 = vadd.xlane.f32.xlu1 %v412_v35  ;;  %v374_v5 = vsel %vm364_vm1, %v359_v0, 0.0  ;;  %v377_v8 = vsel %vm364_vm1, %v360_v3, 0.0  ;;  %v380_v10 = vsel %vm364_vm1, %v361_v6, 0.0  ;;  %v363_v11 = vmul.f32 %v314_v7, %v314_v7 }
  0x20   : > { %v383_v12 = vsel %vm364_vm1, %v362_v9, 0.0  ;;  %v2776_v4 = vmov 920167782  }
  0x21   : > { %v386_v13 = vsel %vm364_vm1, %v363_v11, 0.0  ;;  %v2772_v11 = vmov 1326507024  }
  0x22   : > { %416 = vadd.xlane.f32.xlu0 %v415_v36 }
  0x23   : > { %419 = vadd.xlane.f32.xlu1 %v418_v38 }
  0x26   : > { %333 = vadd.xlane.f32.xlu0 %v332_v40 }
  0x27   : > { %336 = vadd.xlane.f32.xlu1 %v335_v42 }
  0x2a   : > { %339 = vadd.xlane.f32.xlu0 %v338_v44 }
  0x2b   : > { %342 = vadd.xlane.f32.xlu1 %v341_v46 }
  0x2e   : > { %345 = vadd.xlane.f32.xlu0 %v344_v48 }
  0x2f   : > { %348 = vadd.xlane.f32.xlu1 %v347_v51 }
  0x32   : > { %351 = vadd.xlane.f32.xlu0 %v350_v54  ;;  %v2773_v54 = vmov 683565275  }
  0x33   : > { %354 = vadd.xlane.f32.xlu1 %v353_v57 }
  0x36   : > { %366 = vadd.xlane.f32.xlu0 %v365_v60  ;;  %v1759_v60 = vmov 2475754826  }
  0x37   : > { %369 = vadd.xlane.f32.xlu1 %v368_v63  ;;  %v1760_v63 = vmov 2131351028  }
  0x3a   : > { %372 = vadd.xlane.f32.xlu0 %v371_v2  ;;  %v1761_v2 = vmov 2102212464  }
  0x3b   : > { %375 = vadd.xlane.f32.xlu1 %v374_v5 }
  0x3e   : > { %378 = vadd.xlane.f32.xlu0 %v377_v8 }
  0x3f   : > { %381 = vadd.xlane.f32.xlu1 %v380_v10 }
  0x42   : > { %384 = vadd.xlane.f32.xlu0 %v383_v12 }
  0x43   : > { %387 = vadd.xlane.f32.xlu1 %v386_v13 }
  0xeb   : > { %v1631_v15 = vpop.f32.mrb[0].mxu0 }
  0xec   : > { %v1925_v16 = vadd.f32 %v1631_v15, %v1922_v14  ;;  %v538_v18 = vpop.f32.mrb[1].mxu0 }
  0xed   : > { %v1637_v17 = vpop.f32.mrb[0].mxu1  ;;  %v1931_v20 = vadd.f32 %v1922_v14, %v538_v18 }
  0xee   : > { %v1928_v19 = vadd.f32 %v1637_v17, %v1922_v14  ;;  %v1933_v21 = vpop.f32.mrb[1].mxu1  ;;  %v728_v22 = vand.u32 2147483647, %v1925_v16  ;;  %v731_v23 = vand.u32 2139095040, %v1925_v16 }
  0xef   : > { %v1939_v26 = vpop.f32.mrb[2].mxu0  ;;  %v627_v31 = vand.u32 2139095040, %v1931_v20  ;;  %v624_v49 = vand.u32 2147483647, %v1931_v20 }
  0xf0   : > { %v1144_v24 = vand.u32 2147483647, %v1928_v19  ;;  %v1147_v25 = vand.u32 2139095040, %v1928_v19  ;;  %v732_v27 = vshrl.u32 %v731_v23, 23  ;;  %v735_v28 = vand.u32 8388607, %v728_v22 }
  0xf1   : > { %v1946_v33 = vpop.f32.mrb[2].mxu1  ;;  %v1948_v34 = vpop.f32.mrb[3].mxu0  ;;  %v628_v36 = vshrl.u32 %v627_v31, 23 }
  0xf2   : > { %v1148_v29 = vshrl.u32 %v1147_v25, 23  ;;  %v1151_v30 = vand.u32 8388607, %v1144_v24  ;;  %v1579_v32 = vadd.s32 4294967169, %v732_v27  ;;  %v736_v38 = vor.u32 8388608, %v735_v28  ;;  %v1950_v42 = vpop.f32.mrb[3].mxu1 }
  0xf3   : > { %v1575_v41 = vadd.s32 4294967169, %v628_v36 }
  0xf4   : > { %v1595_v35 = vadd.s32 4294967169, %v1148_v29  ;;  %v738_v37 = vadd.s32 1, %v1579_v32  ;;  %v1152_v39 = vor.u32 8388608, %v1151_v30  ;;  %v1952_v47 = vshll.u32 %v736_v38, 8 }
  0xf5   : > { %v1957_v51 = vadd.s32 1, %v1575_v41 }
  0xf6   : > { %v1154_v40 = vadd.s32 1, %v1595_v35  ;;  %vm739_vm2 = vcmp.gt.s32.totalorder %v738_v37, 0  ;;  %v1954_v48 = vshll.u32 %v1152_v39, 8 }
  0xf7   : > { %v740_v43 = vsel %vm739_vm2, %v738_v37, 0  ;;  %vm635_vm8 = vcmp.gt.s32.totalorder %v1957_v51, 0 }
  0xf8   : > { %vm1155_vm3 = vcmp.gt.s32.totalorder %v1154_v40, 0  ;;  %v741_v44 = vshrl.u32 %v740_v43, 5  ;;  %v742_v45 = vand.u32 31, %v740_v43 }
  0xf9   : > { %v1156_v46 = vsel %vm1155_vm3, %v1154_v40, 0 }
  0xfa   : > { %v743_v52 = vsub.s32 32, %v742_v45  ;;  %v745_v55 = vshll.u32 %v2773_v54, %v742_v45  ;;  %v1960_v57 = vshrl.u32 %v1156_v46, 5  ;;  %v1158_v58 = vand.u32 31, %v1156_v46 }
  0xfb   : > { %v748_v61 = vshll.u32 %v1759_v60, %v742_v45  ;;  %v751_v0 = vshll.u32 %v1760_v63, %v742_v45  ;;  %v754_v3 = vshll.u32 %v1761_v2, %v742_v45  ;;  %v757_v5 = vshll.u32 %v2776_v4, %v742_v45 }
  0xfc   : > { %v746_v6 = vshrl.u32 %v1759_v60, %v743_v52  ;;  %v749_v7 = vshrl.u32 %v1760_v63, %v743_v52  ;;  %v752_v8 = vshrl.u32 %v1761_v2, %v743_v52  ;;  %vm760_vm4 = vcmp.lt.s32.totalorder %v741_v44, 1 }
  0xfd   : > { %v744_v9 = vshrl.u32 %v2773_v54, %v743_v52  ;;  %v755_v10 = vshrl.u32 %v2776_v4, %v743_v52  ;;  %v758_v12 = vshrl.u32 %v2772_v11, %v743_v52  ;;  %vm761_vm5 = vcmp.lt.s32.totalorder %v741_v44, 2 }
  0xfe   : > { %v747_v13 = vor.u32 %v746_v6, %v745_v55  ;;  %v750_v15 = vor.u32 %v749_v7, %v748_v61  ;;  %v753_v17 = vor.u32 %v752_v8, %v751_v0  ;;  %v1159_v18 = vsub.s32 32, %v1158_v58 }
  0xff   : > { %v756_v23 = vor.u32 %v755_v10, %v754_v3  ;;  %v759_v25 = vor.u32 %v758_v12, %v757_v5  ;;  %vm762_vm6 = vcmp.lt.s32.totalorder %v741_v44, 3  ;;  %vm763_vm7 = vcmp.lt.s32.totalorder %v741_v44, 4 }
 0x100   : > { %v764_v27 = vsel %vm760_vm4, %v744_v9, %v747_v13  ;;  %v765_v28 = vsel %vm763_vm7, %v753_v17, 2102212464  ;;  %v768_v29 = vsel %vm760_vm4, %v747_v13, %v750_v15  ;;  %v772_v30 = vsel %vm760_vm4, %v750_v15, %v753_v17 }
 0x101   : > { %v766_v31 = vsel %vm762_vm6, %v750_v15, %v765_v28  ;;  %v769_v32 = vsel %vm763_vm7, %v756_v23, 920167782  ;;  %v773_v35 = vsel %vm763_vm7, %v759_v25, 1326507024  ;;  %v1161_v36 = vshll.u32 %v2773_v54, %v1158_v58 }
 0x102   : > { %v770_v37 = vsel %vm762_vm6, %v753_v17, %v769_v32  ;;  %v774_v38 = vsel %vm762_vm6, %v756_v23, %v773_v35  ;;  %v1162_v39 = vshrl.u32 %v1759_v60, %v1159_v18  ;;  %v1164_v40 = vshll.u32 %v1759_v60, %v1158_v58 }
 0x103   : > { %v767_v41 = vsel %vm761_vm5, %v764_v27, %v766_v31  ;;  %v771_v43 = vsel %vm761_vm5, %v768_v29, %v770_v37  ;;  %v775_v45 = vsel %vm761_vm5, %v772_v30, %v774_v38  ;;  %v1165_v46 = vshrl.u32 %v1760_v63, %v1159_v18 }
 0x104   : > { %v1984_v52 = vmul.u32.u64.low %v1952_v47, %v775_v45  ;;  %v1985_v55 = vmul.u32.u64.high %v1952_v47, %v775_v45, %v1984_v52  ;;  %v1988_v61 = vmul.u32.u64.low %v1952_v47, %v771_v43  ;;  %v1989_v0 = vmul.u32.u64.high %v1952_v47, %v771_v43, %v1988_v61 }
 0x105   : > { %v1163_v3 = vor.u32 %v1162_v39, %v1161_v36  ;;  %v1166_v5 = vor.u32 %v1165_v46, %v1164_v40  ;;  %v1167_v6 = vshll.u32 %v1760_v63, %v1158_v58  ;;  %v1168_v7 = vshrl.u32 %v1761_v2, %v1159_v18 }
 0x106   : > { %v1160_v44 = vshrl.u32 %v2773_v54, %v1159_v18  ;;  %v1170_v8 = vshll.u32 %v1761_v2, %v1158_v58  ;;  %v1171_v9 = vshrl.u32 %v2776_v4, %v1159_v18  ;;  %v1174_v10 = vshrl.u32 %v2772_v11, %v1159_v18 }
 0x107   : > { %v783_v12 = vmul.u32 %v1952_v47, %v767_v41  ;;  %v1169_v13 = vor.u32 %v1168_v7, %v1167_v6  ;;  %v1173_v15 = vshll.u32 %v2776_v4, %v1158_v58  ;;  %vm1176_vm9 = vcmp.lt.s32.totalorder %v1960_v57, 1 }
 0x108   : > { %vm785_vm10 = vc.u32 %v1985_v55, %v1988_v61  ;;  %v786_v17 = vadd.s32 1, %v1989_v0  ;;  %v1172_v23 = vor.u32 %v1171_v9, %v1170_v8  ;;  %vm1177_vm11 = vcmp.lt.s32.totalorder %v1960_v57, 2 }
 0x109   : > { %v1175_v25 = vor.u32 %v1174_v10, %v1173_v15  ;;  %vm1178_vm12 = vcmp.lt.s32.totalorder %v1960_v57, 3  ;;  %vm1179_vm13 = vcmp.lt.s32.totalorder %v1960_v57, 4  ;;  %v1184_v18 = vsel %vm1176_vm9, %v1163_v3, %v1166_v5 }
 0x10a   : > { %v787_v47 = vsel %vm785_vm10, %v786_v17, %v1989_v0  ;;  %v1181_v27 = vsel %vm1179_vm13, %v1169_v13, 2102212464  ;;  %v1185_v58 = vsel %vm1179_vm13, %v1172_v23, 920167782  ;;  %v1188_v28 = vsel %vm1176_vm9, %v1166_v5, %v1169_v13 }
 0x10b   : > { %v788_v29 = vadd.s32 %v787_v47, %v783_v12  ;;  %v1180_v30 = vsel %vm1176_vm9, %v1160_v44, %v1163_v3  ;;  %v1186_v31 = vsel %vm1178_vm12, %v1169_v13, %v1185_v58  ;;  %v1189_v32 = vsel %vm1179_vm13, %v1175_v25, 1326507024 }
 0x10c   : > { %v1182_v35 = vsel %vm1178_vm12, %v1166_v5, %v1181_v27  ;;  %v1187_v36 = vsel %vm1177_vm11, %v1184_v18, %v1186_v31  ;;  %v1190_v37 = vsel %vm1178_vm12, %v1172_v23, %v1189_v32  ;;  %v636_v38 = vsel %vm635_vm8, %v1957_v51, 0 }
 0x10d   : > { %v789_v39 = vadd.s32 536870912, %v788_v29  ;;  %v1191_v40 = vsel %vm1177_vm11, %v1188_v28, %v1190_v37  ;;  %v2016_v41 = vmul.u32.u64.low %v1954_v48, %v1187_v36  ;;  %v2017_v43 = vmul.u32.u64.high %v1954_v48, %v1187_v36, %v2016_v41 }
 0x10e   : > { %v2021_v45 = vmul.u32.u64.low %v1954_v48, %v1191_v40  ;;  %v2022_v46 = vmul.u32.u64.high %v1954_v48, %v1191_v40, %v2021_v45  ;;  %v2026_v52 = vadd.f32 %v1922_v14, %v1933_v21  ;;  %v1183_v51 = vsel %vm1177_vm11, %v1180_v30, %v1182_v35 }
 0x10f   : > { %v2028_v0 = vshrl.u32 %v789_v39, 30  ;;  %v638_v3 = vand.u32 31, %v636_v38  ;;  %v1202_v6 = vadd.s32 1, %v2017_v43  ;;  %v631_v7 = vand.u32 8388607, %v624_v49 }
 0x110   : > { %v1199_v8 = vmul.u32 %v1954_v48, %v1183_v51  ;;  %vm1201_vm14 = vc.u32 %v2022_v46, %v2016_v41  ;;  %v1043_v21 = vand.u32 2139095040, %v2026_v52  ;;  %v637_v18 = vshrl.u32 %v636_v38, 5 }
 0x111   : > { %v791_v5 = vshll.u32 %v2028_v0, 30  ;;  %v639_v44 = vsub.s32 32, %v638_v3  ;;  %v1203_v57 = vsel %vm1201_vm14, %v1202_v6, %v2017_v43  ;;  %v632_v15 = vor.u32 8388608, %v631_v7 }
 0x112   : > { %v1204_v10 = vadd.s32 %v1203_v57, %v1199_v8  ;;  %v641_v48 = vshll.u32 %v2773_v54, %v638_v3  ;;  %v1044_v47 = vshrl.u32 %v1043_v21, 23  ;;  %v644_v58 = vshll.u32 %v1759_v60, %v638_v3 }
 0x113   : > { %v792_v9 = vsub.s32 %v788_v29, %v791_v5  ;;  %v642_v12 = vshrl.u32 %v1759_v60, %v639_v44  ;;  %v645_v17 = vshrl.u32 %v1760_v63, %v639_v44  ;;  %v648_v23 = vshrl.u32 %v1761_v2, %v639_v44 }
 0x114   : > { %v1205_v25 = vadd.s32 536870912, %v1204_v10  ;;  %v647_v28 = vshll.u32 %v1760_v63, %v638_v3  ;;  %v651_v29 = vshrl.u32 %v2776_v4, %v639_v44  ;;  %v650_v32 = vshll.u32 %v1761_v2, %v638_v3 }
 0x115   : > { %v794_v13 = vsub.s32 0, %v792_v9  ;;  %v643_v31 = vor.u32 %v642_v12, %v641_v48  ;;  %v654_v35 = vshrl.u32 %v2772_v11, %v639_v44  ;;  %v646_v37 = vor.u32 %v645_v17, %v644_v58 }
 0x116   : > { %v2048_v30 = vshrl.u32 %v1205_v25, 30  ;;  %v649_v38 = vor.u32 %v648_v23, %v647_v28  ;;  %v653_v39 = vshll.u32 %v2776_v4, %v638_v3  ;;  %v784_v40 = vadd.s32 %v1988_v61, %v1985_v55 }
 0x117   : > { %v1580_v27 = vmin.u32 %v794_v13, %v792_v9  ;;  %v652_v45 = vor.u32 %v651_v29, %v650_v32  ;;  %v672_v51 = vshll.u32 %v632_v15, 8  ;;  %vm659_vm15 = vcmp.lt.s32.totalorder %v637_v18, 4 }
 0x118   : > { %v1207_v43 = vshll.u32 %v2048_v30, 30  ;;  %v655_v6 = vor.u32 %v654_v35, %v653_v39  ;;  %v1591_v7 = vadd.s32 4294967169, %v1044_v47  ;;  %vm656_vm0 = vcmp.lt.s32.totalorder %v637_v18, 1 }
 0x119   : > { %v796_v36 = vclz %v1580_v27  ;;  %vm658_vm2 = vcmp.lt.s32.totalorder %v637_v18, 3  ;;  %v665_v21 = vsel %vm659_vm15, %v652_v45, 920167782  ;;  %vm657_vm4 = vcmp.lt.s32.totalorder %v637_v18, 2 }
 0x11a   : > { %v2056_v8 = vsub.s32 %v1204_v10, %v1207_v43  ;;  %v664_v3 = vsel %vm656_vm0, %v643_v31, %v646_v37  ;;  %v666_v55 = vsel %vm658_vm2, %v649_v38, %v665_v21  ;;  %v814_v57 = vsub.s32 4, %v2028_v0 }
 0x11b   : > { %v1581_v5 = vadd.s32 4294967294, %v796_v36  ;;  %v668_v13 = vsel %vm656_vm0, %v646_v37, %v649_v38  ;;  %v661_v17 = vsel %vm659_vm15, %v649_v38, 2102212464  ;;  %v669_v23 = vsel %vm659_vm15, %v655_v6, 1326507024 }
 0x11c   : > { %v1210_v12 = vsub.s32 0, %v2056_v8  ;;  %v640_v48 = vshrl.u32 %v2773_v54, %v639_v44  ;;  %v667_v47 = vsel %vm657_vm4, %v664_v3, %v666_v55  ;;  %v670_v27 = vsel %vm658_vm2, %v652_v45, %v669_v23 }
 0x11d   : > { %vm1582_vm3 = vcmp.lt.s32.totalorder %v1581_v5, 0  ;;  %v671_v32 = vsel %vm657_vm4, %v668_v13, %v670_v27  ;;  %v662_v36 = vsel %vm658_vm2, %v646_v37, %v661_v17  ;;  %vm730_vm5 = vcmp.lt.s32.totalorder %v1925_v16, 0 }
 0x11e   : > { %v799_v61 = vsel %vm1582_vm3, 0, %v1581_v5  ;;  %v1596_v29 = vmin.u32 %v1210_v12, %v2056_v8  ;;  %v660_v35 = vsel %vm656_vm0, %v640_v48, %v643_v31  ;;  %v815_v6 = vsel %vm730_vm5, %v814_v57, %v2028_v0 }
 0x11f   : > { %v800_v15 = vsub.s32 32, %v799_v61  ;;  %v804_v10 = vsub.s32 4294967266, %v799_v61  ;;  %v801_v25 = vshll.u32 %v792_v9, %v799_v61  ;;  %v663_v37 = vsel %vm657_vm4, %v660_v35, %v662_v36 }
 0x120   : > { %v2073_v43 = vmul.u32.u64.low %v672_v51, %v671_v32  ;;  %v2074_v9 = vmul.u32.u64.high %v672_v51, %v671_v32, %v2073_v43  ;;  %v2077_v44 = vmul.u32.u64.low %v672_v51, %v667_v47  ;;  %v2078_v5 = vmul.u32.u64.high %v672_v51, %v667_v47, %v2077_v44 }
 0x121   : > { %v802_v58 = vshrl.u32 %v784_v40, %v800_v15  ;;  %v805_v28 = vadd.s32 127, %v804_v10  ;;  %v1050_v40 = vadd.s32 1, %v1591_v7  ;;  %v1212_v31 = vclz %v1596_v29 }
 0x122   : > { %v1040_v21 = vand.u32 2147483647, %v2026_v52  ;;  %vm2088_vm7 = vcmp.le.f32.partialorder %v728_v22, 0.7853982  ;;  %vm681_vm8 = vc.u32 %v2074_v9, %v2077_v44  ;;  %v682_v18 = vadd.s32 1, %v2078_v5 }
 0x123   : > { %v803_v38 = vor.u32 %v802_v58, %v801_v25  ;;  %v806_v39 = vshll.u32 %v805_v28, 23  ;;  %vm1051_vm6 = vcmp.gt.s32.totalorder %v1050_v40, 0  ;;  %v817_v0 = vsel %vm2088_vm7, 0, %v815_v6 }
 0x124   : > { %v1597_v57 = vadd.s32 4294967294, %v1212_v31  ;;  %v679_v12 = vmul.u32 %v672_v51, %v663_v37  ;;  %v1052_v13 = vsel %vm1051_vm6, %v1050_v40, 0  ;;  %v683_v15 = vsel %vm681_vm8, %v682_v18, %v2078_v5 }
 0x125   : > { %v807_v45 = vor.u32 4788187, %v806_v39  ;;  %v810_v61 = vcvt.s32.f32 %v803_v38  ;;  %v1047_v22 = vand.u32 8388607, %v1040_v21  ;;  %v821_v17 = vadd.s32 3, %v817_v0 }
 0x126   : > { %v684_v23 = vadd.s32 %v683_v15, %v679_v12  ;;  %v1054_v25 = vand.u32 31, %v1052_v13  ;;  %vm1598_vm9 = vcmp.lt.s32.totalorder %v1597_v57, 0  ;;  %v2114_v39 = vshrl.u32 %v1052_v13, 5 }
 0x127   : > { %v808_v55 = vand.u32 2147483647, %v807_v45  ;;  %v2105_v58 = vand.u32 3, %v821_v17  ;;  %v1048_v29 = vor.u32 8388608, %v1047_v22  ;;  %v2109_v32 = vsel %vm1598_vm9, 0, %v1597_v57 }
 0x128   : > { %v685_v47 = vadd.s32 536870912, %v684_v23  ;;  %v1055_v27 = vsub.s32 32, %v1054_v25  ;;  %v1063_v43 = vshll.u32 %v1760_v63, %v1054_v25  ;;  %v1057_v40 = vshll.u32 %v2773_v54, %v1054_v25 }
 0x129   : > { %v811_v7 = vmul.f32 %v810_v61, %v808_v55  ;;  %v1060_v45 = vshll.u32 %v1759_v60, %v1054_v25  ;;  %v1066_v6 = vshll.u32 %v1761_v2, %v1054_v25  ;;  %v1200_v37 = vadd.s32 %v2016_v41, %v2022_v46 }
 0x12a   : > { %v2107_v28 = vshrl.u32 %v685_v47, 30  ;;  %v1058_v35 = vshrl.u32 %v1759_v60, %v1055_v27  ;;  %v1061_v36 = vshrl.u32 %v1760_v63, %v1055_v27  ;;  %v1064_v5 = vshrl.u32 %v1761_v2, %v1055_v27 }
 0x12b   : > { %v812_v10 = vxor.u32 2147483648, %v811_v7  ;;  %v1067_v31 = vshrl.u32 %v2776_v4, %v1055_v27  ;;  %v1220_v3 = vsub.s32 4294967266, %v2109_v32  ;;  %v1070_v57 = vshrl.u32 %v2772_v11, %v1055_v27 }
 0x12c   : > { %v687_v38 = vshll.u32 %v2107_v28, 30  ;;  %v1065_v61 = vor.u32 %v1064_v5, %v1063_v43  ;;  %v1059_v0 = vor.u32 %v1058_v35, %v1057_v40  ;;  %v1062_v18 = vor.u32 %v1061_v36, %v1060_v45 }
 0x12d   : > { %v813_v48 = vsel %vm730_vm5, %v812_v10, %v811_v7  ;;  %v1068_v7 = vor.u32 %v1067_v31, %v1066_v6  ;;  %vm823_vm10 = vcmp.lt.s32.totalorder %v2105_v58, 2  ;;  %vm824_vm11 = vcmp.eq.s32.totalorder %v2105_v58, 0  ;;  %v399_v31 = vpop.xlane.xlu0 %398 }
 0x12e   : > { %v816_v51 = vsel %vm2088_vm7, %v1925_v16, %v813_v48  ;;  %v2125_v55 = vsub.s32 %v684_v23, %v687_v38  ;;  %vm827_vm12 = vcmp.eq.s32.totalorder %v2105_v58, 2  ;;  %v1069_v41 = vshll.u32 %v2776_v4, %v1054_v25 }
 0x12f   : > { %1699 = vcosq.f32 %v816_v51  ;;  %vm820_vm13 = vweird.f32 %v1925_v16  ;;  %vm1072_vm14 = vcmp.lt.s32.totalorder %v2114_v39, 1  ;;  %vm1075_vm15 = vcmp.lt.s32.totalorder %v2114_v39, 4 }
 0x130   : > { %1701 = vsinq.f32 %v816_v51  ;;  %v690_v12 = vsub.s32 0, %v2125_v55  ;;  %v1088_v46 = vshll.u32 %v1048_v29, 8  ;;  %v2138_v13 = vadd.f32 %v1939_v26, %v1922_v14 }
 0x131   : > { %v1056_v22 = vshrl.u32 %v2773_v54, %v1055_v27  ;;  %v1071_v10 = vor.u32 %v1070_v57, %v1069_v41  ;;  %v1077_v17 = vsel %vm1075_vm15, %v1065_v61, 2102212464  ;;  %v1216_v23 = vsub.s32 32, %v2109_v32 }
 0x132   : > { %v1576_v15 = vmin.u32 %v690_v12, %v2125_v55  ;;  %v1221_v25 = vadd.s32 127, %v1220_v3  ;;  %v1080_v48 = vsel %vm1072_vm14, %v1059_v0, %v1062_v18  ;;  %v1081_v47 = vsel %vm1075_vm15, %v1068_v7, 920167782 }
 0x133   : > { %vm1073_vm0 = vcmp.lt.s32.totalorder %v2114_v39, 2  ;;  %vm1074_vm2 = vcmp.lt.s32.totalorder %v2114_v39, 3  ;;  %v1076_v27 = vsel %vm1072_vm14, %v1056_v22, %v1059_v0  ;;  %v1084_v43 = vsel %vm1072_vm14, %v1062_v18, %v1065_v61 }
 0x134   : > { %v692_v26 = vclz %v1576_v15  ;;  %v1078_v36 = vsel %vm1074_vm2, %v1062_v18, %v1077_v17  ;;  %v1082_v38 = vsel %vm1074_vm2, %v1065_v61, %v1081_v47  ;;  %v1085_v6 = vsel %vm1075_vm15, %v1071_v10, 1326507024 }
 0x135   : > { %v1083_v45 = vsel %vm1073_vm0, %v1080_v48, %v1082_v38  ;;  %v1086_v0 = vsel %vm1074_vm2, %v1068_v7, %v1085_v6  ;;  %v1222_v18 = vshll.u32 %v1221_v25, 23  ;;  %v405_v7 = vpop.xlane.xlu1 %404  ;;  %v1218_v47 = vshrl.u32 %v1200_v37, %v1216_v23 }
 0x136   : > { %v1577_v40 = vadd.s32 4294967294, %v692_v26  ;;  %v2161_v57 = vmul.u32.u64.low %v1088_v46, %v1083_v45  ;;  %v2162_v12 = vmul.u32.u64.high %v1088_v46, %v1083_v45, %v2161_v57  ;;  %v1087_v41 = vsel %vm1073_vm0, %v1084_v43, %v1086_v0 }
 0x137   : > { %v2173_v10 = vmul.u32.u64.low %v1088_v46, %v1087_v41  ;;  %v2174_v17 = vmul.u32.u64.high %v1088_v46, %v1087_v41, %v2173_v10  ;;  %v421_v26 = vmul.f32 -2.0, %v399_v31  ;;  %v1217_v38 = vshll.u32 %v2056_v8, %v2109_v32 }
 0x138   : > { %vm1578_vm3 = vcmp.lt.s32.totalorder %v1577_v40, 0  ;;  %v1098_v58 = vadd.s32 1, %v2162_v12  ;;  %v1223_v43 = vor.u32 4788187, %v1222_v18  ;;  %vm1146_vm5 = vcmp.lt.s32.totalorder %v1928_v19, 0 }
 0x139   : > { %v1700_v51 = vpop.eup %1699  ;;  %v2171_v22 = vsel %vm1578_vm3, 0, %v1577_v40  ;;  %vm1097_vm4 = vc.u32 %v2174_v17, %v2161_v57  ;;  %v1219_v39 = vor.u32 %v1218_v47, %v1217_v38  ;;  %v2192_v45 = vmul.f32 %v421_v26, %v1877_v50 }
 0x13a   : > { %v1702_v29 = vpop.eup %1701  ;;  %v828_v35 = vxor.u32 2147483648, %v1700_v51  ;;  %v700_v25 = vsub.s32 4294967266, %v2171_v22  ;;  %v710_v31 = vsub.s32 4, %v2107_v28  ;;  %v696_v0 = vsub.s32 32, %v2171_v22 }
 0x13b   : > { %v825_v5 = vxor.u32 2147483648, %v1702_v29  ;;  %v1226_v41 = vcvt.s32.f32 %v1219_v39  ;;  %vm626_vm6 = vcmp.lt.s32.totalorder %v1931_v20, 0  ;;  %vm2234_vm8 = vcmp.le.f32.partialorder %v1144_v24, 0.7853982 }
 0x13c   : > { %v829_v3 = vsel %vm827_vm12, %v828_v35, %v1702_v29  ;;  %v423_v29 = vmul.f32 -2.0, %v405_v7  ;;  %v939_v35 = vand.u32 2139095040, %v2138_v13  ;;  %v701_v16 = vadd.s32 127, %v700_v25 }
 0x13d   : > { %v826_v61 = vsel %vm824_vm11, %v1700_v51, %v825_v5  ;;  %v1079_v51 = vsel %vm1073_vm0, %v1076_v27, %v1078_v36  ;;  %v402_v5 = vpop.xlane.xlu0 %401  ;;  %v1230_v27 = vsub.s32 4, %v2048_v30  ;;  %v1099_v36 = vsel %vm1097_vm4, %v1098_v58, %v2162_v12 }
 0x13e   : > { %v830_v15 = vsel %vm823_vm10, %v826_v61, %v829_v3  ;;  %v1095_v40 = vmul.u32 %v1088_v46, %v1079_v51  ;;  %v940_v37 = vshrl.u32 %v939_v35, 23  ;;  %v422_v23 = vmul.f32 -2.0, %v402_v5  ;;  %v408_v51 = vpop.xlane.xlu1 %407 }
 0x13f   : > { %v2178_v48 = vsel %vm820_vm13, nan, %v830_v15  ;;  %v2195_v6 = vmul.f32 %v423_v29, %v1887_v56  ;;  %v1224_v46 = vand.u32 2147483647, %v1223_v43  ;;  %v936_v3 = vand.u32 2147483647, %v2138_v13 }
 0x140   : > { %v1100_v8 = vadd.s32 %v1099_v36, %v1095_v40  ;;  %v1587_v32 = vadd.s32 4294967169, %v940_v37  ;;  %v702_v61 = vshll.u32 %v701_v16, 23  ;;  %v2202_v50 = vmul.f32 %v422_v23, %v1881_v53 }
 0x141   : > { %v2207_v56 = vsel %vm1146_vm5, %v1230_v27, %v2048_v30  ;;  %v680_v15 = vadd.s32 %v2077_v44, %v2074_v9  ;;  %v2216_v7 = vadd.f32 %v1946_v33, %v1922_v14  ;;  %v2218_v53 = vmul.f32 %v1226_v41, %v1224_v46  ;;  %v411_v9 = vpop.xlane.xlu0 %410 }
 0x142   : > { %v1101_v18 = vadd.s32 536870912, %v1100_v8  ;;  %v946_v12 = vadd.s32 1, %v1587_v32  ;;  %v2223_v47 = vsel %vm626_vm6, %v710_v31, %v2107_v28  ;;  %v943_v30 = vand.u32 8388607, %v936_v3 }
 0x143   : > { %v698_v44 = vshrl.u32 %v680_v15, %v696_v0  ;;  %v703_v26 = vor.u32 4788187, %v702_v61  ;;  %v2228_v33 = vmul.f32 -2.0, %v408_v51  ;;  %v2230_v35 = vmul.f32 -2.0, %v411_v9 }
 0x144   : > { %v2212_v10 = vshrl.u32 %v1101_v18, 30  ;;  %vm947_vm7 = vcmp.gt.s32.totalorder %v946_v12, 0  ;;  %vm2240_vm9 = vcmp.le.f32.partialorder %v624_v49, 0.7853982  ;;  %v697_v43 = vshll.u32 %v2125_v55, %v2171_v22 }
 0x145   : > { %v948_v25 = vsel %vm947_vm7, %v946_v12, 0  ;;  %v1355_v40 = vand.u32 2139095040, %v2216_v7  ;;  %v1228_v37 = vxor.u32 2147483648, %v2218_v53  ;;  %v1233_v24 = vsel %vm2234_vm8, 0, %v2207_v56 }
 0x146   : > { %v1103_v29 = vshll.u32 %v2212_v10, 30  ;;  %v950_v58 = vand.u32 31, %v948_v25  ;;  %v713_v49 = vsel %vm2240_vm9, 0, %v2223_v47  ;;  %v944_v23 = vor.u32 8388608, %v943_v30 }
 0x147   : > { %v699_v39 = vor.u32 %v698_v44, %v697_v43  ;;  %v704_v27 = vand.u32 2147483647, %v703_v26  ;;  %v949_v0 = vshrl.u32 %v948_v25, 5  ;;  %v1356_v18 = vshrl.u32 %v1355_v40, 23 }
 0x148   : > { %v2246_v5 = vsub.s32 %v1100_v8, %v1103_v29  ;;  %v951_v16 = vsub.s32 32, %v950_v58  ;;  %v953_v22 = vshll.u32 %v2773_v54, %v950_v58  ;;  %v956_v8 = vshll.u32 %v1759_v60, %v950_v58 }
 0x149   : > { %v959_v61 = vshll.u32 %v1760_v63, %v950_v58  ;;  %v962_v56 = vshll.u32 %v1761_v2, %v950_v58  ;;  %v706_v47 = vcvt.s32.f32 %v699_v39  ;;  %v2775_v9 = vand.u32 2147483647, %v2216_v7 }
 0x14a   : > { %v1106_v55 = vsub.s32 0, %v2246_v5  ;;  %v954_v36 = vshrl.u32 %v1759_v60, %v951_v16  ;;  %v957_v32 = vshrl.u32 %v1760_v63, %v951_v16  ;;  %v960_v46 = vshrl.u32 %v1761_v2, %v951_v16 }
 0x14b   : > { %v963_v15 = vshrl.u32 %v2776_v4, %v951_v16  ;;  %v965_v26 = vshll.u32 %v2776_v4, %v950_v58  ;;  %v966_v29 = vshrl.u32 %v2772_v11, %v951_v16  ;;  %v984_v25 = vshll.u32 %v944_v23, 8 }
 0x14c   : > { %v1592_v31 = vmin.u32 %v1106_v55, %v2246_v5  ;;  %v955_v12 = vor.u32 %v954_v36, %v953_v22  ;;  %v958_v41 = vor.u32 %v957_v32, %v956_v8  ;;  %v961_v51 = vor.u32 %v960_v46, %v959_v61 }
 0x14d   : > { %v964_v44 = vor.u32 %v963_v15, %v962_v56  ;;  %v707_v43 = vmul.f32 %v706_v47, %v704_v27  ;;  %vm968_vm10 = vcmp.lt.s32.totalorder %v949_v0, 1  ;;  %v1603_v40 = vadd.s32 4294967169, %v1356_v18  ;;  %v414_v18 = vpop.xlane.xlu1 %413 }
 0x14e   : > { %v1108_v30 = vclz %v1592_v31  ;;  %v952_v22 = vshrl.u32 %v2773_v54, %v951_v16  ;;  %v967_v36 = vor.u32 %v966_v29, %v965_v26  ;;  %vm971_vm11 = vcmp.lt.s32.totalorder %v949_v0, 4 }
 0x14f   : > { %v976_v39 = vsel %vm968_vm10, %v955_v12, %v958_v41  ;;  %vm970_vm13 = vcmp.lt.s32.totalorder %v949_v0, 3  ;;  %v973_v8 = vsel %vm971_vm11, %v961_v51, 2102212464  ;;  %v977_v32 = vsel %vm971_vm11, %v964_v44, 920167782 }
 0x150   : > { %v1593_v55 = vadd.s32 4294967294, %v1108_v30  ;;  %vm969_vm14 = vcmp.lt.s32.totalorder %v949_v0, 2  ;;  %v978_v46 = vsel %vm970_vm13, %v961_v51, %v977_v32  ;;  %v980_v58 = vsel %vm968_vm10, %v958_v41, %v961_v51 }
 0x151   : > { %v981_v31 = vsel %vm971_vm11, %v967_v36, 1326507024  ;;  %v708_v23 = vxor.u32 2147483648, %v707_v43  ;;  %v972_v61 = vsel %vm968_vm10, %v952_v22, %v955_v12  ;;  %v979_v16 = vsel %vm969_vm14, %v976_v39, %v978_v46 }
 0x152   : > { %vm1594_vm12 = vcmp.lt.s32.totalorder %v1593_v55, 0  ;;  %v974_v56 = vsel %vm970_vm13, %v958_v41, %v973_v8  ;;  %v982_v15 = vsel %vm970_vm13, %v964_v44, %v981_v31  ;;  %v1229_v26 = vsel %vm1146_vm5, %v1228_v37, %v2218_v53 }
 0x153   : > { %v2272_v27 = vsel %vm1594_vm12, 0, %v1593_v55  ;;  %v2276_v47 = vmul.u32.u64.low %v984_v25, %v979_v16  ;;  %v2277_v30 = vmul.u32.u64.high %v984_v25, %v979_v16, %v2276_v47  ;;  %v1237_v51 = vadd.s32 3, %v1233_v24 }
 0x154   : > { %v426_v29 = vmul.f32 -2.0, %v414_v18  ;;  %v983_v55 = vsel %vm969_vm14, %v980_v58, %v982_v15  ;;  %v1116_v36 = vsub.s32 4294967266, %v2272_v27  ;;  %v1362_v39 = vadd.s32 1, %v1603_v40 }
 0x155   : > { %v2285_v12 = vmul.u32.u64.low %v984_v25, %v983_v55  ;;  %v2286_v22 = vmul.u32.u64.high %v984_v25, %v983_v55, %v2285_v12  ;;  %v2290_v41 = vmul.f32 %v2228_v33, %v1893_v59  ;;  %v709_v44 = vsel %vm626_vm6, %v708_v23, %v707_v43 }
 0x156   : > { %v717_v8 = vadd.s32 3, %v713_v49  ;;  %v975_v53 = vsel %vm969_vm14, %v972_v61, %v974_v56  ;;  %v1232_v37 = vsel %vm2234_vm8, %v1928_v19, %v1229_v26  ;;  %v994_v24 = vadd.s32 1, %v2277_v30 }
 0x157   : > { %v1359_v32 = vand.u32 8388607, %v2775_v9  ;;  %vm1363_vm15 = vcmp.gt.s32.totalorder %v1362_v39, 0  ;;  %v2303_v59 = vmul.f32 %v2230_v35, %v1899_v62  ;;  %v2305_v33 = vand.u32 3, %v1237_v51 }
 0x158   : > { %v2308_v49 = vmul.f32 %v426_v29, %v1905_v1  ;;  %v1364_v0 = vsel %vm1363_vm15, %v1362_v39, 0  ;;  %v712_v28 = vsel %vm2240_vm9, %v1931_v20, %v709_v44  ;;  %v1117_v43 = vadd.s32 127, %v1116_v36 }
 0x159   : > { %v991_v40 = vmul.u32 %v984_v25, %v975_v53  ;;  %vm993_vm0 = vc.u32 %v2286_v22, %v2276_v47  ;;  %1703 = vcosq.f32 %v1232_v37  ;;  %v2315_v46 = vand.u32 3, %v717_v8 }
 0x15a   : > { %v995_v62 = vsel %vm993_vm0, %v994_v24, %v2277_v30  ;;  %v1366_v35 = vand.u32 31, %v1364_v0  ;;  %1705 = vsinq.f32 %v1232_v37  ;;  %v1096_v1 = vadd.s32 %v2161_v57, %v2174_v17 }
 0x15b   : > { %v996_v58 = vadd.s32 %v995_v62, %v991_v40  ;;  %v1360_v31 = vor.u32 8388608, %v1359_v32  ;;  %1707 = vcosq.f32 %v712_v28  ;;  %v1112_v38 = vsub.s32 32, %v2272_v27 }
 0x15c   : > { %v1367_v23 = vsub.s32 32, %v1366_v35  ;;  %v2323_v25 = vadd.f32 %v1922_v14, %v1948_v34  ;;  %v1118_v61 = vshll.u32 %v1117_v43, 23  ;;  %v2325_v18 = vshrl.u32 %v1364_v0, 5 }
 0x15d   : > { %v997_v16 = vadd.s32 536870912, %v996_v58  ;;  %v1369_v56 = vshll.u32 %v2773_v54, %v1366_v35  ;;  %v1372_v57 = vshll.u32 %v1759_v60, %v1366_v35  ;;  %v1375_v30 = vshll.u32 %v1760_v63, %v1366_v35 }
 0x15e   : > { %v1370_v15 = vshrl.u32 %v1759_v60, %v1367_v23  ;;  %v1373_v17 = vshrl.u32 %v1760_v63, %v1367_v23  ;;  %v1376_v51 = vshrl.u32 %v1761_v2, %v1367_v23  ;;  %v1379_v14 = vshrl.u32 %v2776_v4, %v1367_v23 }
 0x15f   : > { %v2332_v26 = vshrl.u32 %v997_v16, 30  ;;  %v1382_v34 = vshrl.u32 %v2772_v11, %v1367_v23  ;;  %v1378_v36 = vshll.u32 %v1761_v2, %v1366_v35  ;;  %v1381_v12 = vshll.u32 %v2776_v4, %v1366_v35 }
 0x160   : > { %v1371_v29 = vor.u32 %v1370_v15, %v1369_v56  ;;  %v1374_v55 = vor.u32 %v1373_v17, %v1372_v57  ;;  %1709 = vsinq.f32 %v712_v28  ;;  %v1114_v39 = vshrl.u32 %v1096_v1, %v1112_v38 }
 0x161   : > { %v999_v44 = vshll.u32 %v2332_v26, 30  ;;  %v1377_v8 = vor.u32 %v1376_v51, %v1375_v30  ;;  %v1113_v53 = vshll.u32 %v2246_v5, %v2272_v27  ;;  %v1380_v37 = vor.u32 %v1379_v14, %v1378_v36 }
 0x162   : > { %v1383_v24 = vor.u32 %v1382_v34, %v1381_v12  ;;  %v2342_v32 = vshll.u32 %v1360_v31, 8  ;;  %vm1384_vm2 = vcmp.lt.s32.totalorder %v2325_v18, 1  ;;  %vm1387_vm3 = vcmp.lt.s32.totalorder %v2325_v18, 4 }
 0x163   : > { %v2344_v0 = vsub.s32 %v996_v58, %v999_v44  ;;  %v835_v43 = vand.u32 2139095040, %v2323_v25  ;;  %v2349_v28 = vpop.eup %1703  ;;  %vm1042_vm4 = vcmp.lt.s32.totalorder %v2026_v52, 0  ;;  %v1119_v40 = vor.u32 4788187, %v1118_v61 }
 0x164   : > { %vm1386_vm5 = vcmp.lt.s32.totalorder %v2325_v18, 3  ;;  %v1392_v5 = vsel %vm1384_vm2, %v1371_v29, %v1374_v55  ;;  %v1393_v27 = vsel %vm1387_vm3, %v1380_v37, 920167782  ;;  %v2357_v62 = vpop.eup %1705  ;;  %v1115_v35 = vor.u32 %v1114_v39, %v1113_v53  ;;  %v2393_v39 = vpop.xlane.xlu0 %416 }
 0x165   : > { %v1002_v1 = vsub.s32 0, %v2344_v0  ;;  %vm1385_vm6 = vcmp.lt.s32.totalorder %v2325_v18, 2  ;;  %v1394_v58 = vsel %vm1386_vm5, %v1377_v8, %v1393_v27  ;;  %v2363_v31 = vpop.eup %1707  ;;  %v1389_v38 = vsel %vm1387_vm3, %v1377_v8, 2102212464 }
 0x166   : > { %v1395_v61 = vsel %vm1385_vm6, %v1392_v5, %v1394_v58  ;;  %v1396_v16 = vsel %vm1384_vm2, %v1374_v55, %v1377_v8  ;;  %v1397_v56 = vsel %vm1387_vm3, %v1383_v24, 1326507024  ;;  %v1368_v57 = vshrl.u32 %v2773_v54, %v1367_v23 }
 0x167   : > { %v1588_v15 = vmin.u32 %v1002_v1, %v2344_v0  ;;  %v1398_v17 = vsel %vm1386_vm5, %v1380_v37, %v1397_v56  ;;  %v836_v30 = vshrl.u32 %v835_v43, 23  ;;  %vm1243_vm7 = vcmp.eq.s32.totalorder %v2305_v33, 2 }
 0x168   : > { %v1120_v51 = vand.u32 2147483647, %v1119_v40  ;;  %v1399_v14 = vsel %vm1385_vm6, %v1396_v16, %v1398_v17  ;;  %v2381_v34 = vmul.u32.u64.low %v2342_v32, %v1395_v61  ;;  %v2382_v36 = vmul.u32.u64.high %v2342_v32, %v1395_v61, %v2381_v34 }
 0x169   : > { %vm1240_vm8 = vcmp.eq.s32.totalorder %v2305_v33, 0  ;;  %vm2388_vm9 = vcmp.le.f32.partialorder %v1040_v21, 0.7853982  ;;  %v1126_v12 = vsub.s32 4, %v2212_v10  ;;  %v1004_v44 = vclz %v1588_v15 }
 0x16a   : > { %v1388_v8 = vsel %vm1384_vm2, %v1368_v57, %v1371_v29  ;;  %v1390_v53 = vsel %vm1386_vm5, %v1374_v55, %v1389_v38  ;;  %v1122_v37 = vcvt.s32.f32 %v1115_v35  ;;  %v1583_v21 = vadd.s32 4294967169, %v836_v30  ;;  %v1710_v40 = vpop.eup %1709 }
 0x16b   : > { %v2400_v24 = vmul.u32.u64.low %v2342_v32, %v1399_v14  ;;  %v2401_v43 = vmul.u32.u64.high %v2342_v32, %v1399_v14, %v2400_v24  ;;  %v1244_v5 = vxor.u32 2147483648, %v2349_v28  ;;  %vm720_vm10 = vcmp.eq.s32.totalorder %v2315_v46, 0 }
 0x16c   : > { %vm723_vm11 = vcmp.eq.s32.totalorder %v2315_v46, 2  ;;  %vm938_vm12 = vcmp.lt.s32.totalorder %v2138_v13, 0  ;;  %v1589_v27 = vadd.s32 4294967294, %v1004_v44  ;;  %vm1239_vm13 = vcmp.lt.s32.totalorder %v2305_v33, 2  ;;  %v2433_v44 = vpop.xlane.xlu1 %419 }
 0x16d   : > { %v1123_v29 = vmul.f32 %v1122_v37, %v1120_v51  ;;  %v1391_v55 = vsel %vm1385_vm6, %v1388_v8, %v1390_v53  ;;  %v1410_v35 = vadd.s32 1, %v2382_v36  ;;  %v842_v1 = vadd.s32 1, %v1583_v21  ;;  %v2429_v51 = vpop.xlane.xlu0 %333 }
 0x16e   : > { %v1241_v58 = vxor.u32 2147483648, %v2357_v62  ;;  %vm719_vm14 = vcmp.lt.s32.totalorder %v2315_v46, 2  ;;  %v1127_v38 = vsel %vm1042_vm4, %v1126_v12, %v2212_v10  ;;  %vm1590_vm15 = vcmp.lt.s32.totalorder %v1589_v27, 0 }
 0x16f   : > { %v2771_v61 = vand.u32 2147483647, %v2323_v25  ;;  %v721_v16 = vxor.u32 2147483648, %v1710_v40  ;;  %v724_v56 = vxor.u32 2147483648, %v2363_v31  ;;  %vm2420_vm0 = vcmp.le.f32.partialorder %v936_v3, 0.7853982 }
 0x170   : > { %v1007_v15 = vsel %vm1590_vm15, 0, %v1589_v27  ;;  %vm1409_vm2 = vc.u32 %v2401_v43, %v2381_v34  ;;  %v992_v57 = vadd.s32 %v2276_v47, %v2286_v22  ;;  %v1407_v30 = vmul.u32 %v2342_v32, %v1391_v55 }
 0x171   : > { %v1008_v10 = vsub.s32 32, %v1007_v15  ;;  %v1012_v17 = vsub.s32 4294967266, %v1007_v15  ;;  %v1124_v14 = vxor.u32 2147483648, %v1123_v29  ;;  %v1022_v12 = vsub.s32 4, %v2332_v26 }
 0x172   : > { %v1411_v3 = vsel %vm1409_vm2, %v1410_v35, %v2382_v36  ;;  %vm843_vm3 = vcmp.gt.s32.totalorder %v842_v1, 0  ;;  %v1245_v8 = vsel %vm1243_vm7, %v1244_v5, %v2357_v62  ;;  %v1242_v32 = vsel %vm1240_vm8, %v2349_v28, %v1241_v58 }
 0x173   : > { %v1010_v53 = vshrl.u32 %v992_v57, %v1008_v10  ;;  %v1013_v47 = vadd.s32 127, %v1012_v17  ;;  %v1412_v22 = vadd.s32 %v1411_v3, %v1407_v30  ;;  %v725_v37 = vsel %vm723_vm11, %v724_v56, %v1710_v40  ;;  %v1747_v56 = vld [vmem:[%s2768_s4] ss:$0 sm:$0xff] }
 0x174   : > { %v1129_v36 = vsel %vm2388_vm9, 0, %v1127_v38  ;;  %v844_v24 = vsel %vm843_vm3, %v842_v1, 0  ;;  %v722_v21 = vsel %vm720_vm10, %v2363_v31, %v721_v16  ;;  %v1009_v62 = vshll.u32 %v2344_v0, %v1007_v15  ;;  %v2462_v38 = vpop.xlane.xlu0 %339  ;;  %v2476_v15 = vpop.xlane.xlu1 %336 }
 0x175   : > { %v1014_v5 = vshll.u32 %v1013_v47, 23  ;;  %v1413_v27 = vadd.s32 536870912, %v1412_v22  ;;  %v1125_v55 = vsel %vm1042_vm4, %v1124_v14, %v1123_v29  ;;  %v1023_v28 = vsel %vm938_vm12, %v1022_v12, %v2332_v26 }
 0x176   : > { %v839_v40 = vand.u32 8388607, %v2771_v61  ;;  %v846_v35 = vand.u32 31, %v844_v24  ;;  %v2458_v1 = vsel %vm1239_vm13, %v1242_v32, %v1245_v8  ;;  %v1011_v31 = vor.u32 %v1010_v53, %v1009_v62 }
 0x177   : > { %v1015_v58 = vor.u32 4788187, %v1014_v5  ;;  %v2460_v0 = vshrl.u32 %v1413_v27, 30  ;;  %v2466_v29 = vsel %vm719_vm14, %v722_v21, %v725_v37  ;;  %v2468_v16 = vadd.s32 3, %v1129_v36 }
 0x178   : > { %v847_v26 = vsub.s32 32, %v846_v35  ;;  %v2474_v33 = vadd.f32 %v1747_v56, %v1950_v42  ;;  %v2481_v57 = vsel %vm2388_vm9, %v2026_v52, %v1125_v55  ;;  %v1025_v10 = vsel %vm2420_vm0, 0, %v1023_v28  ;;  %v2498_v55 = vpop.xlane.xlu0 %345 }
 0x179   : > { %v1016_v46 = vand.u32 2147483647, %v1015_v58  ;;  %v1415_v17 = vshll.u32 %v2460_v0, 30  ;;  %v840_v30 = vor.u32 8388608, %v839_v40  ;;  %v1018_v3 = vcvt.s32.f32 %v1011_v31  ;;  %v2502_v31 = vpop.xlane.xlu1 %342 }
 0x17a   : > { %2791 = vst [vmem:[#allocation2_spill] sm:$0xff] %v2474_v33  ;;  %v850_v14 = vshrl.u32 %v1759_v60, %v847_v26  ;;  %v853_v12 = vshrl.u32 %v1760_v63, %v847_v26  ;;  %v856_v42 = vshrl.u32 %v1761_v2, %v847_v26  ;;  %v849_v23 = vshll.u32 %v2773_v54, %v846_v35 }
 0x17b   : > { %v2489_v8 = vsub.s32 %v1412_v22, %v1415_v17  ;;  %v859_v53 = vshrl.u32 %v2776_v4, %v847_v26  ;;  %v845_v47 = vshrl.u32 %v844_v24, 5  ;;  %v852_v32 = vshll.u32 %v1759_v60, %v846_v35 }
 0x17c   : > { %v855_v37 = vshll.u32 %v1760_v63, %v846_v35  ;;  %v1251_v36 = vand.u32 2139095040, %v2474_v33  ;;  %v1019_v21 = vmul.f32 %v1018_v3, %v1016_v46  ;;  %v851_v5 = vor.u32 %v850_v14, %v849_v23 }
 0x17d   : > { %v1418_v62 = vsub.s32 0, %v2489_v8  ;;  %v858_v27 = vshll.u32 %v1761_v2, %v846_v35  ;;  %v854_v22 = vor.u32 %v853_v12, %v852_v32  ;;  %v861_v40 = vshll.u32 %v2776_v4, %v846_v35 }
 0x17e   : > { %v857_v28 = vor.u32 %v856_v42, %v855_v37  ;;  %v862_v24 = vshrl.u32 %v2772_v11, %v847_v26  ;;  %1711 = vcosq.f32 %v2481_v57  ;;  %v1029_v58 = vadd.s32 3, %v1025_v10 }
 0x17f   : > { %v1604_v56 = vmin.u32 %v1418_v62, %v2489_v8  ;;  %v860_v46 = vor.u32 %v859_v53, %v858_v27  ;;  %v2506_v14 = vshll.u32 %v840_v30, 8  ;;  %v2778_v3 = vand.u32 2147483647, %v2474_v33  ;;  %v2511_v30 = vpop.xlane.xlu0 %351 }
 0x180   : > { %v863_v17 = vor.u32 %v862_v24, %v861_v40  ;;  %v1252_v23 = vshrl.u32 %v1251_v36, 23  ;;  %v848_v42 = vshrl.u32 %v2773_v54, %v847_v26  ;;  %vm864_vm4 = vcmp.lt.s32.totalorder %v845_v47, 1 }
 0x181   : > { %v1420_v12 = vclz %v1604_v56  ;;  %vm867_vm5 = vcmp.lt.s32.totalorder %v845_v47, 4  ;;  %vm716_vm6 = vweird.f32 %v1931_v20  ;;  %v1020_v35 = vxor.u32 2147483648, %v1019_v21  ;;  %v2513_v56 = vpop.xlane.xlu1 %348 }
 0x182   : > { %vm865_vm7 = vcmp.lt.s32.totalorder %v845_v47, 2  ;;  %v869_v32 = vsel %vm867_vm5, %v857_v28, 2102212464  ;;  %v872_v10 = vsel %vm864_vm4, %v851_v5, %v854_v22  ;;  %vm866_vm8 = vcmp.lt.s32.totalorder %v845_v47, 3 }
 0x183   : > { %v1605_v37 = vadd.s32 4294967294, %v1420_v12  ;;  %v873_v53 = vsel %vm867_vm5, %v860_v46, 920167782  ;;  %v876_v62 = vsel %vm864_vm4, %v854_v22, %v857_v28  ;;  %v868_v27 = vsel %vm864_vm4, %v848_v42, %v851_v5 }
 0x184   : > { %v874_v40 = vsel %vm866_vm8, %v857_v28, %v873_v53  ;;  %v877_v36 = vsel %vm867_vm5, %v863_v17, 1326507024  ;;  %v1599_v24 = vadd.s32 4294967169, %v1252_v23  ;;  %v870_v26 = vsel %vm866_vm8, %v854_v22, %v869_v32 }
 0x185   : > { %vm1606_vm9 = vcmp.lt.s32.totalorder %v1605_v37, 0  ;;  %v875_v61 = vsel %vm865_vm7, %v872_v10, %v874_v40  ;;  %v878_v11 = vsel %vm866_vm8, %v860_v46, %v877_v36  ;;  %v1408_v5 = vadd.s32 %v2381_v34, %v2401_v43  ;;  %v367_v34 = vpop.xlane.xlu0 %366  ;;  %v2538_v47 = vpop.xlane.xlu1 %354 }
 0x186   : > { %v1423_v54 = vsel %vm1606_vm9, 0, %v1605_v37  ;;  %v879_v9 = vsel %vm865_vm7, %v876_v62, %v878_v11  ;;  %v2518_v12 = vmul.u32.u64.low %v2506_v14, %v875_v61  ;;  %v2519_v4 = vmul.u32.u64.high %v2506_v14, %v875_v61, %v2518_v12 }
 0x187   : > { %v1424_v28 = vsub.s32 32, %v1423_v54  ;;  %v1428_v17 = vsub.s32 4294967266, %v1423_v54  ;;  %v1258_v23 = vadd.s32 1, %v1599_v24  ;;  %v1021_v22 = vsel %vm938_vm12, %v1020_v35, %v1019_v21 }
 0x188   : > { %v871_v42 = vsel %vm865_vm7, %v868_v27, %v870_v26  ;;  %v2528_v46 = vmul.u32.u64.low %v2506_v14, %v879_v9  ;;  %v2529_v32 = vmul.u32.u64.high %v2506_v14, %v879_v9, %v2528_v46  ;;  %v2531_v11 = vpop.eup %1711  ;;  %v1425_v61 = vshll.u32 %v2489_v8, %v1423_v54 }
 0x189   : > { %v1426_v10 = vshrl.u32 %v1408_v5, %v1424_v28  ;;  %v1429_v37 = vadd.s32 127, %v1428_v17  ;;  %vm1259_vm10 = vcmp.gt.s32.totalorder %v1258_v23, 0  ;;  %v2535_v43 = vand.u32 3, %v2468_v16 }
 0x18a   : > { %v890_v53 = vadd.s32 1, %v2519_v4  ;;  %v1260_v21 = vsel %vm1259_vm10, %v1258_v23, 0  ;;  %v389_v35 = vadd.f32 %v367_v34, %v2429_v51  ;;  %v2544_v9 = vsel %vm716_vm6, nan, %v2466_v29  ;;  %v370_v23 = vpop.xlane.xlu1 %369 }
 0x18b   : > { %v1427_v54 = vor.u32 %v1426_v10, %v1425_v61  ;;  %v1430_v8 = vshll.u32 %v1429_v37, 23  ;;  %v1262_v62 = vand.u32 31, %v1260_v21  ;;  %v1024_v16 = vsel %vm2420_vm0, %v2138_v13, %v1021_v22 }
 0x18c   : > { %v887_v27 = vmul.u32 %v2506_v14, %v871_v42  ;;  %vm889_vm11 = vc.u32 %v2529_v32, %v2518_v12  ;;  %v1255_v51 = vand.u32 8388607, %v2778_v3  ;;  %1713 = vsinq.f32 %v2481_v57  ;;  %v2567_v57 = vld [vmem:[%s2769_s5] ss:$0 sm:$0xff] }
 0x18d   : > { %v2555_v20 = vand.u32 3, %v1029_v58  ;;  %vm1354_vm12 = vcmp.lt.s32.totalorder %v2216_v7, 0  ;;  %v1431_v29 = vor.u32 4788187, %v1430_v8  ;;  %v891_v40 = vsel %vm889_vm11, %v890_v53, %v2519_v4 }
 0x18e   : > { %v892_v36 = vadd.s32 %v891_v40, %v887_v27  ;;  %v1263_v18 = vsub.s32 32, %v1262_v62  ;;  %v2560_v24 = vmul.f32 -2.0, %v2433_v44  ;;  %v585_v14 = vadd.f32 %v2192_v45, %v389_v35  ;;  %v376_v33 = vpop.xlane.xlu1 %375 }
 0x18f   : > { %1715 = vcosq.f32 %v1024_v16  ;;  %v1432_v5 = vand.u32 2147483647, %v1431_v29  ;;  %v1434_v28 = vcvt.s32.f32 %v1427_v54  ;;  %v1438_v4 = vsub.s32 4, %v2460_v0 }
 0x190   : > { %1717 = vsinq.f32 %v1024_v16  ;;  %v893_v58 = vadd.s32 536870912, %v892_v36  ;;  %v1256_v17 = vor.u32 8388608, %v1255_v51  ;;  %v1266_v22 = vshrl.u32 %v1759_v60, %v1263_v18 }
 0x191   : > { %v1435_v44 = vmul.f32 %v1434_v28, %v1432_v5  ;;  %v1269_v45 = vshrl.u32 %v1760_v63, %v1263_v18  ;;  %v1272_v42 = vshrl.u32 %v1761_v2, %v1263_v18  ;;  %v1271_v61 = vshll.u32 %v1760_v63, %v1262_v62 }
 0x192   : > { %v2573_v46 = vshrl.u32 %v893_v58, 30  ;;  %v2792_v10 = vmov 920167782   ;;  %v600_v34 = vmul.f32 %v2567_v57, %v585_v14  ;;  %v2793_v53 = vand.u32 2147483647, %v2216_v7 }
 0x193   : > { %v1275_v37 = vshrl.u32 %v2792_v10, %v1263_v18  ;;  %v1261_v54 = vshrl.u32 %v1260_v21, 5  ;;  %v2796_v8 = vmov 683565275   ;;  %v1268_v27 = vshll.u32 %v1759_v60, %v1262_v62 }
 0x194   : > { %vm2580_vm13 = vcmp.le.f32.partialorder %v2793_v53, 0.7853982  ;;  %v1265_v16 = vshll.u32 %v2796_v8, %v1262_v62  ;;  %v1274_v51 = vshll.u32 %v1761_v2, %v1262_v62  ;;  %v1436_v29 = vxor.u32 2147483648, %v1435_v44 }
 0x195   : > { %v895_v63 = vshll.u32 %v2573_v46, 30  ;;  %v1273_v40 = vor.u32 %v1272_v42, %v1271_v61  ;;  %v2797_v5 = vmov 1326507024   ;;  %v1270_v58 = vor.u32 %v1269_v45, %v1268_v27 }
 0x196   : > { %v1278_v28 = vshrl.u32 %v2797_v5, %v1263_v18  ;;  %v1267_v14 = vor.u32 %v1266_v22, %v1265_v16  ;;  %v1276_v3 = vor.u32 %v1275_v37, %v1274_v51  ;;  %v1277_v53 = vshll.u32 %v2792_v10, %v1262_v62  ;;  %v2600_v42 = vpop.eup %1713  ;;  %v373_v5 = vpop.xlane.xlu0 %372 }
 0x197   : > { %v2593_v21 = vsel %vm1354_vm12, %v1438_v4, %v2460_v0  ;;  %v2595_v26 = vsub.s32 %v892_v36, %v895_v63  ;;  %v2597_v60 = vshll.u32 %v1256_v17, 8  ;;  %v390_v2 = vadd.f32 %v370_v23, %v2476_v15 }
 0x198   : > { %v1264_v22 = vshrl.u32 %v2796_v8, %v1263_v18  ;;  %v1279_v45 = vor.u32 %v1278_v28, %v1277_v53  ;;  %vm1283_vm14 = vcmp.lt.s32.totalorder %v1261_v54, 4  ;;  %v608_v61 = vmul.f32 1.442695, %v600_v34  ;;  %v382_v28 = vpop.xlane.xlu1 %381 }
 0x199   : > { %v1437_v62 = vsel %vm1354_vm12, %v1436_v29, %v1435_v44  ;;  %v898_v0 = vsub.s32 0, %v2595_v26  ;;  %vm1280_vm15 = vcmp.lt.s32.totalorder %v1261_v54, 1  ;;  %v1285_v36 = vsel %vm1283_vm14, %v1273_v40, 2102212464  ;;  %v2607_v4 = vpop.eup %1715 }
 0x19a   : > { %vm1281_vm0 = vcmp.lt.s32.totalorder %v1261_v54, 2  ;;  %vm1282_vm2 = vcmp.lt.s32.totalorder %v1261_v54, 3  ;;  %v1288_v15 = vsel %vm1280_vm15, %v1267_v14, %v1270_v58  ;;  %v1289_v17 = vsel %vm1283_vm14, %v1276_v3, 920167782  ;;  %v2610_v23 = vpop.eup %1717  ;;  %v379_v54 = vpop.xlane.xlu0 %378 }
 0x19b   : > { %v1584_v18 = vmin.u32 %v898_v0, %v2595_v26  ;;  %v1284_v10 = vsel %vm1280_vm15, %v1264_v22, %v1267_v14  ;;  %v1286_v37 = vsel %vm1282_vm2, %v1270_v58, %v1285_v36  ;;  %v1290_v44 = vsel %vm1282_vm2, %v1273_v40, %v1289_v17 }
 0x19c   : > { %v1291_v34 = vsel %vm1281_vm0, %v1288_v15, %v1290_v44  ;;  %v1292_v8 = vsel %vm1280_vm15, %v1270_v58, %v1273_v40  ;;  %v1293_v16 = vsel %vm1283_vm14, %v1279_v45, 1326507024  ;;  %1719 = vpow2.f32 %v608_v61 }
 0x19d   : > { %v1036_v27 = vxor.u32 2147483648, %v2607_v4  ;;  %v1440_v51 = vsel %vm2580_vm13, %v2216_v7, %v1437_v62  ;;  %v1441_v29 = vsel %vm2580_vm13, 0, %v2593_v21  ;;  %v900_v63 = vclz %v1584_v18 }
 0x19e   : > { %v1294_v14 = vsel %vm1282_vm2, %v1276_v3, %v1293_v16  ;;  %v2626_v40 = vmul.u32.u64.low %v2597_v60, %v1291_v34  ;;  %v2627_v58 = vmul.u32.u64.high %v2597_v60, %v1291_v34, %v2626_v40  ;;  %v586_v53 = vadd.f32 %v2202_v50, %v390_v2 }
 0x19f   : > { %vm1035_vm3 = vcmp.eq.s32.totalorder %v2555_v20, 2  ;;  %v1585_v22 = vadd.s32 4294967294, %v900_v63  ;;  %v1287_v45 = vsel %vm1281_vm0, %v1284_v10, %v1286_v37  ;;  %v1295_v35 = vsel %vm1281_vm0, %v1292_v8, %v1294_v14  ;;  %v388_v14 = vpop.xlane.xlu1 %387 }
 0x1a0   : > { %v392_v21 = vadd.f32 %v376_v33, %v2502_v31  ;;  %vm1032_vm4 = vcmp.eq.s32.totalorder %v2555_v20, 0  ;;  %v2637_v3 = vmul.u32.u64.low %v2597_v60, %v1295_v35  ;;  %v2638_v61 = vmul.u32.u64.high %v2597_v60, %v1295_v35, %v2637_v3 }
 0x1a1   : > { %v601_v62 = vmul.f32 %v2567_v57, %v586_v53  ;;  %v394_v0 = vadd.f32 %v382_v28, %v2513_v56  ;;  %v1033_v50 = vxor.u32 2147483648, %v2610_v23  ;;  %1721 = vcosq.f32 %v1440_v51 }
 0x1a2   : > { %v888_v2 = vadd.s32 %v2518_v12, %v2529_v32  ;;  %vm1586_vm5 = vcmp.lt.s32.totalorder %v1585_v22, 0  ;;  %v1306_v33 = vadd.s32 1, %v2627_v58  ;;  %v588_v15 = vadd.f32 %v2290_v41, %v392_v21 }
 0x1a3   : > { %v903_v36 = vsel %vm1586_vm5, 0, %v1585_v22  ;;  %v610_v31 = vmul.f32 1.442695, %v601_v62  ;;  %vm1136_vm6 = vcmp.eq.s32.totalorder %v2535_v43, 0  ;;  %vm1139_vm7 = vcmp.eq.s32.totalorder %v2535_v43, 2 }
 0x1a4   : > { %1723 = vsinq.f32 %v1440_v51  ;;  %v904_v56 = vsub.s32 32, %v903_v36  ;;  %v908_v17 = vsub.s32 4294967266, %v903_v36  ;;  %v1303_v18 = vmul.u32 %v2597_v60, %v1287_v45  ;;  %v1748_v51 = vld [vmem:[%s1873_s17 + $0x38] sm:$0xff] }
 0x1a5   : > { %vm1305_vm8 = vc.u32 %v2638_v61, %v2626_v40  ;;  %1725 = vpow2.f32 %v610_v31  ;;  %v590_v12 = vadd.f32 %v2308_v49, %v394_v0  ;;  %v393_v32 = vadd.f32 %v379_v54, %v2498_v55 }
 0x1a6   : > { %vm1031_vm9 = vcmp.lt.s32.totalorder %v2555_v20, 2  ;;  %v905_v41 = vshll.u32 %v2595_v26, %v903_v36  ;;  %v906_v10 = vshrl.u32 %v888_v2, %v904_v56  ;;  %v909_v37 = vadd.s32 127, %v908_v17  ;;  %v1720_v34 = vpop.eup %1719 }
 0x1a7   : > { %v1307_v44 = vsel %vm1305_vm8, %v1306_v33, %v2627_v58  ;;  %v1137_v60 = vxor.u32 2147483648, %v2600_v42  ;;  %v1445_v49 = vadd.s32 3, %v1441_v29  ;;  %vm834_vm10 = vcmp.lt.s32.totalorder %v2323_v25, 0 }
 0x1a8   : > { %v1308_v55 = vadd.s32 %v1307_v44, %v1303_v18  ;;  %v603_v8 = vmul.f32 %v2567_v57, %v588_v15  ;;  %v907_v26 = vor.u32 %v906_v10, %v905_v41  ;;  %v910_v16 = vshll.u32 %v909_v37, 23 }
 0x1a9   : > { %v584_v63 = vmul.f32 %v1748_v51, %v2560_v24  ;;  %v1456_v28 = vmul.f32 %v1720_v34, %v2544_v9  ;;  %vm1135_vm11 = vcmp.lt.s32.totalorder %v2535_v43, 2  ;;  %v1037_v29 = vsel %vm1035_vm3, %v1036_v27, %v2610_v23 }
 0x1aa   : > { %v1309_v58 = vadd.s32 536870912, %v1308_v55  ;;  %v391_v53 = vadd.f32 %v373_v5, %v2462_v38  ;;  %v614_v22 = vmul.f32 1.442695, %v603_v8  ;;  %vm1028_vm12 = vweird.f32 %v2138_v13 }
 0x1ab   : > { %v1034_v45 = vsel %vm1032_vm4, %v2607_v4, %v1033_v50  ;;  %v911_v24 = vor.u32 4788187, %v910_v16  ;;  %1464 = vst.msk [vmem:[%s2661_s27] sm:$0xff] %vm364_vm1, %v1456_v28  ;;  %v605_v9 = vmul.f32 %v2567_v57, %v590_v12  ;;  %v589_v35 = vadd.f32 %v2303_v59, %v393_v32  ;;  %v1722_v27 = vpop.eup %1721 }
 0x1ac   : > { %v918_v21 = vsub.s32 4, %v2573_v46  ;;  %v2683_v23 = vshrl.u32 %v1309_v58, 30  ;;  %1727 = vpow2.f32 %v614_v22  ;;  %v396_v38 = vadd.f32 %v388_v14, %v2538_v47 }
 0x1ad   : > { %v912_v5 = vand.u32 2147483647, %v911_v24  ;;  %v914_v3 = vcvt.s32.f32 %v907_v26  ;;  %v618_v62 = vmul.f32 1.442695, %v605_v9  ;;  %v604_v4 = vmul.f32 %v2567_v57, %v589_v35 }
 0x1ae   : > { %vm1236_vm13 = vweird.f32 %v1928_v19  ;;  %v1138_v0 = vsel %vm1136_vm6, %v2531_v11, %v1137_v60  ;;  %v2798_v59 = vxor.u32 2147483648, %v2531_v11  ;;  %v1311_v47 = vshll.u32 %v2683_v23, 30  ;;  %v1724_v54 = vpop.eup %1723 }
 0x1af   : > { %v592_v2 = vadd.f32 %v584_v63, %v396_v38  ;;  %v915_v36 = vmul.f32 %v914_v3, %v912_v5  ;;  %v587_v33 = vadd.f32 %v2195_v6, %v391_v53  ;;  %1729 = vpow2.f32 %v618_v62  ;;  %v1726_v15 = vpop.eup %1725 }
 0x1b0   : > { %v1141_v50 = vsel %vm1139_vm7, %v2798_v59, %v2600_v42  ;;  %v616_v31 = vmul.f32 1.442695, %v604_v4  ;;  %v1038_v56 = vsel %vm1031_vm9, %v1034_v45, %v1037_v29  ;;  %v1446_v17 = vand.u32 3, %v1445_v49  ;;  %v385_v4 = vpop.xlane.xlu0 %384 }
 0x1b1   : > { %v2700_v18 = vsub.s32 %v1308_v55, %v1311_v47  ;;  %v607_v11 = vmul.f32 %v2567_v57, %v592_v2  ;;  %v916_v42 = vxor.u32 2147483648, %v915_v36  ;;  %v919_v12 = vsel %vm834_vm10, %v918_v21, %v2573_v46  ;;  %v1749_v2 = vld [vmem:[%s1873_s17 + $0x30] sm:$0xff] }
 0x1b2   : > { %v1457_v32 = vmul.f32 %v1726_v15, %v2178_v48  ;;  %1731 = vpow2.f32 %v616_v31  ;;  %v1449_v6 = vxor.u32 2147483648, %v1724_v54  ;;  %v1452_v41 = vxor.u32 2147483648, %v1722_v27 }
 0x1b3   : > { %v1314_v10 = vsub.s32 0, %v2700_v18  ;;  %v622_v20 = vmul.f32 1.442695, %v607_v11  ;;  %v1142_v37 = vsel %vm1135_vm11, %v1138_v0, %v1141_v50  ;;  %v2799_v44 = vand.u32 2147483647, %v2323_v25 }
 0x1b4   : > { %v917_v46 = vsel %vm834_vm10, %v916_v42, %v915_v36  ;;  %1465 = vst.msk [vmem:[%s2661_s27 + $0x8] sm:$0xff] %vm364_vm1, %v1457_v32  ;;  %v602_v48 = vmul.f32 %v2567_v57, %v587_v33  ;;  %v1039_v60 = vsel %vm1028_vm12, nan, %v1038_v56  ;;  %vm1448_vm15 = vcmp.eq.s32.totalorder %v1446_v17, 0 }
 0x1b5   : > { %vm2712_vm14 = vcmp.le.f32.partialorder %v2799_v44, 0.7853982  ;;  %v1600_v49 = vmin.u32 %v1314_v10, %v2700_v18  ;;  %1733 = vpow2.f32 %v622_v20  ;;  %vm1451_vm0 = vcmp.eq.s32.totalorder %v1446_v17, 2  ;;  %v2802_v20 = vld [vmem:[#allocation2_spill] sm:$0xff] }
 0x1b6   : > { %v920_v43 = vsel %vm2712_vm14, %v2323_v25, %v917_v46  ;;  %v921_v55 = vsel %vm2712_vm14, 0, %v919_v12  ;;  %v1728_v8 = vpop.eup %1727  ;;  %v1450_v26 = vsel %vm1448_vm15, %v1722_v27, %v1449_v6  ;;  %v1453_v16 = vsel %vm1451_vm0, %v1452_v41, %v1724_v54 }
 0x1b7   : > { %1735 = vcosq.f32 %v920_v43  ;;  %v1316_v13 = vclz %v1600_v49  ;;  %v1247_v51 = vsel %vm1236_vm13, nan, %v2458_v1  ;;  %v612_v63 = vmul.f32 1.442695, %v602_v48 }
 0x1b8   : > { %1737 = vsinq.f32 %v920_v43  ;;  %v1459_v28 = vmul.f32 %v1728_v8, %v1039_v60  ;;  %vm1132_vm2 = vweird.f32 %v2026_v52  ;;  %vm1447_vm3 = vcmp.lt.s32.totalorder %v1446_v17, 2 }
 0x1b9   : > { %v1601_v14 = vadd.s32 4294967294, %v1316_v13  ;;  %v1730_v29 = vpop.eup %1729  ;;  %v1143_v58 = vsel %vm1132_vm2, nan, %v1142_v37  ;;  %v1454_v53 = vsel %vm1447_vm3, %v1450_v26, %v1453_v16  ;;  %v925_v22 = vadd.s32 3, %v921_v55 }
 0x1ba   : > { %1467 = vst.msk [vmem:[%s2661_s27 + $0x18] sm:$0xff] %vm364_vm1, %v1459_v28  ;;  %v1461_v45 = vmul.f32 %v1730_v29, %v1247_v51  ;;  %vm1444_vm5 = vweird.f32 %v2216_v7  ;;  %v1304_v19 = vadd.s32 %v2626_v40, %v2638_v61  ;;  %1739 = vpow2.f32 %v612_v63 }
 0x1bb   : > { %vm1602_vm4 = vcmp.lt.s32.totalorder %v1601_v14, 0  ;;  %v1455_v52 = vsel %vm1444_vm5, nan, %v1454_v53  ;;  %v427_v38 = vmul.f32 -2.0, %v2393_v39  ;;  %v926_v27 = vand.u32 3, %v925_v22 }
 0x1bc   : > { %v1732_v24 = vpop.eup %1731  ;;  %v1319_v1 = vsel %vm1602_vm4, 0, %v1601_v14  ;;  %1469 = vst.msk [vmem:[%s2661_s27 + $0x28] sm:$0xff] %vm364_vm1, %v1461_v45  ;;  %v395_v31 = vadd.f32 %v385_v4, %v2511_v30  ;;  %vm924_vm9 = vweird.f32 %v2323_v25  ;;  %v1334_v32 = vsub.s32 4, %v2683_v23 }
 0x1bd   : > { %v1320_v9 = vsub.s32 32, %v1319_v1  ;;  %v1324_v35 = vsub.s32 4294967266, %v1319_v1  ;;  %v1460_v21 = vmul.f32 %v1732_v24, %v1143_v58  ;;  %v1321_v3 = vshll.u32 %v2700_v18, %v1319_v1 }
 0x1be   : > { %v583_v54 = vmul.f32 %v1749_v2, %v427_v38  ;;  %vm931_vm6 = vcmp.eq.s32.totalorder %v926_v27, 2  ;;  %vm928_vm7 = vcmp.eq.s32.totalorder %v926_v27, 0  ;;  %vm927_vm8 = vcmp.lt.s32.totalorder %v926_v27, 2 }
 0x1bf   : > { %v1734_v5 = vpop.eup %1733  ;;  %v1322_v7 = vshrl.u32 %v1304_v19, %v1320_v9  ;;  %v1325_v62 = vadd.s32 127, %v1324_v35  ;;  %1468 = vst.msk [vmem:[%s2661_s27 + $0x20] sm:$0xff] %vm364_vm1, %v1460_v21  ;;  %vm1250_vm10 = vcmp.lt.s32.totalorder %v2802_v20, 0  ;;  %v2803_v30 = vand.u32 2147483647, %v2802_v20 }
 0x1c0   : > { %v1463_v61 = vmul.f32 %v1734_v5, %v1455_v52  ;;  %v591_v41 = vadd.f32 %v583_v54, %v395_v31  ;;  %v1335_v25 = vsel %vm1250_vm10, %v1334_v32, %v2683_v23  ;;  %vm1340_vm15 = vweird.f32 %v2802_v20 }
 0x1c1   : > { %v1736_v40 = vpop.eup %1735  ;;  %v1323_v50 = vor.u32 %v1322_v7, %v1321_v3  ;;  %v1326_v47 = vshll.u32 %v1325_v62, 23  ;;  %vm1249_vm11 = vcmp.le.f32.partialorder %v2803_v30, 0.7853982 }
 0x1c2   : > { %v1738_v0 = vpop.eup %1737  ;;  %v932_v59 = vxor.u32 2147483648, %v1736_v40  ;;  %1471 = vst.msk [vmem:[%s2661_s27 + $0x38] sm:$0xff] %vm364_vm1, %v1463_v61  ;;  %v606_v44 = vmul.f32 %v2567_v57, %v591_v41  ;;  %v1337_v46 = vsel %vm1249_vm11, 0, %v1335_v25 }
 0x1c3   : > { %v929_v36 = vxor.u32 2147483648, %v1738_v0  ;;  %v1327_v33 = vor.u32 4788187, %v1326_v47  ;;  %v1330_v18 = vcvt.s32.f32 %v1323_v50  ;;  %v1341_v60 = vadd.s32 3, %v1337_v46 }
 0x1c4   : > { %v933_v39 = vsel %vm931_vm6, %v932_v59, %v1738_v0  ;;  %v1740_v11 = vpop.eup %1739  ;;  %v620_v48 = vmul.f32 1.442695, %v606_v44 }
 0x1c5   : > { %v930_v15 = vsel %vm928_vm7, %v1736_v40, %v929_v36  ;;  %v1328_v17 = vand.u32 2147483647, %v1327_v33  ;;  %v1342_v43 = vand.u32 3, %v1341_v60 }
 0x1c6   : > { %v934_v56 = vsel %vm927_vm8, %v930_v15, %v933_v39 }
 0x1c7   : > { %v935_v42 = vsel %vm924_vm9, nan, %v934_v56  ;;  %v1331_v12 = vmul.f32 %v1330_v18, %v1328_v17  ;;  %vm1347_vm12 = vcmp.eq.s32.totalorder %v1342_v43, 2  ;;  %vm1344_vm13 = vcmp.eq.s32.totalorder %v1342_v43, 0 }
 0x1c8   : > { %v1458_v6 = vmul.f32 %v1740_v11, %v935_v42  ;;  %vm1343_vm14 = vcmp.lt.s32.totalorder %v1342_v43, 2 }
 0x1c9   : > { %v1332_v10 = vxor.u32 2147483648, %v1331_v12 }
 0x1ca   : > { %1466 = vst.msk [vmem:[%s2661_s27 + $0x10] sm:$0xff] %vm364_vm1, %v1458_v6 }
 0x1cb   : > { %v1333_v37 = vsel %vm1250_vm10, %v1332_v10, %v1331_v12 }
 0x1cc   : > { %v1336_v34 = vsel %vm1249_vm11, %v2802_v20, %v1333_v37 }
 0x1cd   : > { %1741 = vcosq.f32 %v1336_v34 }
 0x1ce   : > { %1743 = vsinq.f32 %v1336_v34 }
 0x1cf   : > { %1745 = vpow2.f32 %v620_v48 }
 0x1d7   : > { %v1742_v49 = vpop.eup %1741 }
 0x1d8   : > { %v1744_v55 = vpop.eup %1743  ;;  %v1348_v8 = vxor.u32 2147483648, %v1742_v49 }
 0x1d9   : > { %v1345_v26 = vxor.u32 2147483648, %v1744_v55  ;;  %v1746_v13 = vpop.eup %1745 }
 0x1da   : > { %v1349_v16 = vsel %vm1347_vm12, %v1348_v8, %v1744_v55 }
 0x1db   : > { %v1346_v23 = vsel %vm1344_vm13, %v1742_v49, %v1345_v26 }
 0x1dc   : > { %v1350_v57 = vsel %vm1343_vm14, %v1346_v23, %v1349_v16 }
 0x1dd   : > { %v1351_v51 = vsel %vm1340_vm15, nan, %v1350_v57 }
 0x1de   : > { %v1462_v63 = vmul.f32 %v1746_v13, %v1351_v51 }
 0x1e0   : > { %1470 = vst.msk [vmem:[%s2661_s27 + $0x30] sm:$0xff] %vm364_vm1, %v1462_v63 }
 0x1e1 PF: > { %s16_s21 = sadd.s32 1, %s1756_s21  }
 0x1e2   : > { %p13_p4 = scmp.ge.s32.totalorder %s16_s21, 4  }
 0x1e4   :  { %15 = sbr.rel (!%p13_p4) target bundleno = 1 (0x1), region = 80 }

</bundles_post_ra>
